<compile_context>
chip_gen: v7x
topology: tpu7x:2x2x1
jax: 0.10.0
libtpu: 0.0.40
codegen_flags: <defaults>
</compile_context>

<pallas_src>
import functools

import jax
import jax.numpy as jnp
from jax.experimental import pallas as pl
from jax.experimental.pallas import tpu as pltpu

NEG_SLOPE = 0.01          # F.leaky_relu default negative slope
HIDDEN1 = 256
HIDDEN2 = 256
HIDDEN3 = 128
ATOM_PAD = 128            # lane-pad the 51-atom output to a dense vreg width
NEG_BIG = -1e30           # bias on padded atom lanes -> exp() underflows to exactly 0


def _leaky_relu(x):
    return jnp.where(x > 0, x, NEG_SLOPE * x)


def _round_up(x, m):
    return (x + m - 1) // m * m


def critic_kernel(state_ref, action_ref,
                  w1_ref, b1_ref,
                  w2s_ref, w2a_ref, b2_ref,
                  w3_ref, b3_ref,
                  w4_ref, b4_ref,
                  out_ref, *, log_prob: bool):
    # In-kernel bf16 cast of the state tile (VPU work, hidden under MXU/DMA)
    # instead of a separate wrapper-side HBM pad/cast pass.
    state_bf16 = state_ref[...].astype(jnp.bfloat16)

    # fc1 + leaky_relu  (bf16 operands, f32 MXU accumulation, f32 bias)
    h1 = _leaky_relu(
        jnp.dot(state_bf16, w1_ref[...], preferred_element_type=jnp.float32)
        + b1_ref[...])

    # fc2 over cat([h1, action]) as a split contraction:
    #   h1 @ W2[:256]      -> MXU (bf16 x bf16, f32 acc)
    #   action @ W2[256:]  -> A tiny rank-1 broadcast FMAs on the VPU in f32
    # (avoids the previous 32x zero-padded K=128 MXU push for the 4-wide action).
    acc2 = (jnp.dot(h1.astype(jnp.bfloat16), w2s_ref[...],
                    preferred_element_type=jnp.float32)
            + b2_ref[...])
    act = action_ref[...]                       # (tile_b, A) f32
    n_act = act.shape[1]                        # static (e.g. 4) -> unrolled
    for k in range(n_act):
        acc2 = acc2 + act[:, k:k + 1] * w2a_ref[k:k + 1, :]
    h2 = _leaky_relu(acc2)

    # fc3 + leaky_relu
    h3 = _leaky_relu(
        jnp.dot(h2.astype(jnp.bfloat16), w3_ref[...],
                preferred_element_type=jnp.float32)
        + b3_ref[...])

    # fc4 logits over the 128-lane padded atom axis (padded lanes carry NEG_BIG bias)
    logits = (jnp.dot(h3.astype(jnp.bfloat16), w4_ref[...],
                      preferred_element_type=jnp.float32)
              + b4_ref[...])

    # numerically-stable (log_)softmax in f32; padded lanes contribute exactly 0
    m = jnp.max(logits, axis=-1, keepdims=True)
    z = logits - m
    e = jnp.exp(z)
    s = jnp.sum(e, axis=-1, keepdims=True)
    if log_prob:
        out_ref[...] = z - jnp.log(s)
    else:
        out_ref[...] = e / s      # exact normalize; kernel is nowhere near EUP-bound


def critic_forward(state, action, packed, *, log_prob=False, tile_b=512):
    """Runs the whole MLP + softmax hot path inside a single Pallas kernel.

    The batch is tiled along a 1-D grid (pipelined state/action/out DMA),
    weights stay resident in VMEM via constant index_maps (DMA'd once)."""
    B, state_size = state.shape
    A = action.shape[1]
    n_atoms = packed["n_atoms"]

    # Effective batch tile: large (amortizes the per-step ~0.35us overhead and
    # the MXU weight push), 16-row aligned, and -- when the batch allows --
    # capped so the grid has >=2 steps (both v7x TCs busy, I/O DMA pipelines).
    tile_b = _round_up(max(16, tile_b), 16)
    if B >= 32:
        tile_b = min(tile_b, _round_up(pl.cdiv(B, 2), 16))
    tile_b = min(tile_b, _round_up(B, 16))
    b_pad = _round_up(B, tile_b)
    grid = (b_pad // tile_b,)

    # Only pad the (rare) ragged tail; no dtype-changing wrapper pass.
    if b_pad != B:
        state = jnp.pad(state, ((0, b_pad - B), (0, 0)))
        action = jnp.pad(action, ((0, b_pad - B), (0, 0)))

    w1, b1 = packed["w1"], packed["b1"]
    w2s, w2a, b2 = packed["w2s"], packed["w2a"], packed["b2"]
    w3, b3 = packed["w3"], packed["b3"]
    w4, b4 = packed["w4"], packed["b4"]

    def batch_spec(feat):
        return pl.BlockSpec((tile_b, feat), lambda i: (i, 0))

    def resident(arr):
        # same block every grid step -> DMA'd once, stays resident in VMEM
        return pl.BlockSpec(arr.shape, lambda i: (0, 0))

    out = pl.pallas_call(
        functools.partial(critic_kernel, log_prob=log_prob),
        out_shape=jax.ShapeDtypeStruct((b_pad, ATOM_PAD), jnp.float32),
        grid=grid,
        in_specs=[
            batch_spec(state_size),
            batch_spec(A),
            resident(w1), resident(b1),
            resident(w2s), resident(w2a), resident(b2),
            resident(w3), resident(b3),
            resident(w4), resident(b4),
        ],
        out_specs=batch_spec(ATOM_PAD),
        compiler_params=pltpu.CompilerParams(
            dimension_semantics=("parallel",)),   # batch axis independent across steps
    )(state, action, w1, b1, w2s, w2a, b2, w3, b3, w4, b4)

    # TODO(synk): the [:B, :n_atoms] slice is a small lane-sparse XLA copy; defer
    # it to the consumer if the padded f32 slab can be used downstream directly.
    return out[:B, :n_atoms]


def init_params(key, state_size, action_size, n_atoms=51):
    """Deterministic PyTorch-Linear-style init (uniform +/- 1/sqrt(fan_in)).

    f32 'module' parameters: weights [in_features, out_features] (transposed vs
    torch.nn.Linear so the kernel uses plain x @ W + b); biases [1, out]."""
    def linear(k, fan_in, fan_out):
        kw, kb = jax.random.split(k)
        bound = 1.0 / jnp.sqrt(float(fan_in))
        w = jax.random.uniform(kw, (fan_in, fan_out), jnp.float32, -bound, bound)
        b = jax.random.uniform(kb, (1, fan_out), jnp.float32, -bound, bound)
        return w, b

    k1, k2, k3, k4 = jax.random.split(key, 4)
    w1, b1 = linear(k1, state_size, HIDDEN1)
    w2, b2 = linear(k2, HIDDEN1 + action_size, HIDDEN2)
    w3, b3 = linear(k3, HIDDEN2, HIDDEN3)
    w4, b4 = linear(k4, HIDDEN3, n_atoms)
    return {"w1": w1, "b1": b1, "w2": w2, "b2": b2,
            "w3": w3, "b3": b3, "w4": w4, "b4": b4}


def pack_params(params, action_size, n_atoms):
    """Kernel-side operand packing: bf16 matmul weights, f32 biases, fc2 split
    into its state half (bf16, MXU) and action half (f32, VPU rank-1 updates,
    sublane-padded to 8 rows); atom axis lane-padded to 128 with NEG_BIG bias."""
    w2 = params["w2"]
    a_rows = max(8, action_size)
    w2a = jnp.zeros((a_rows, HIDDEN2), jnp.float32)
    w2a = w2a.at[:action_size].set(w2[HIDDEN1:])
    w4 = jnp.zeros((HIDDEN3, ATOM_PAD), jnp.bfloat16)
    w4 = w4.at[:, :n_atoms].set(params["w4"].astype(jnp.bfloat16))
    b4 = jnp.full((1, ATOM_PAD), NEG_BIG, jnp.float32)
    b4 = b4.at[:, :n_atoms].set(params["b4"])
    return {
        "w1": params["w1"].astype(jnp.bfloat16), "b1": params["b1"],
        "w2s": w2[:HIDDEN1].astype(jnp.bfloat16), "w2a": w2a, "b2": params["b2"],
        "w3": params["w3"].astype(jnp.bfloat16), "b3": params["b3"],
        "w4": w4, "b4": b4,
        "n_atoms": n_atoms,
    }


def critic_ref(state, action, params, *, log_prob=False):
    """Pure-JAX f32 reference for correctness checking (matches the torch module)."""
    h1 = _leaky_relu(state @ params["w1"] + params["b1"])
    x = jnp.concatenate([h1, action], axis=1)
    h2 = _leaky_relu(x @ params["w2"] + params["b2"])
    h3 = _leaky_relu(h2 @ params["w3"] + params["b3"])
    logits = h3 @ params["w4"] + params["b4"]
    if log_prob:
        return jax.nn.log_softmax(logits, axis=-1)
    return jax.nn.softmax(logits, axis=-1)


if __name__ == "__main__":
    STATE_SIZE = 16
    ACTION_SIZE = 4
    N_ATOMS = 51
    BATCH = 256          # -> grid=(2,) at the derived tile_b: exercises the pipeline
    VMIN, VMAX = -10.0, 10.0

    key = jax.random.PRNGKey(0)
    kp, ks, ka = jax.random.split(key, 3)

    params_f32 = init_params(kp, STATE_SIZE, ACTION_SIZE, N_ATOMS)
    packed = pack_params(params_f32, ACTION_SIZE, N_ATOMS)
    # support buffer (not used in forward, kept for parity with the module)
    support = jnp.linspace(VMIN, VMAX, N_ATOMS)

    state = jax.random.normal(ks, (BATCH, STATE_SIZE), jnp.float32)
    action = jax.random.uniform(ka, (BATCH, ACTION_SIZE), jnp.float32, -1.0, 1.0)

    # softmax branch
    probs = jax.block_until_ready(
        critic_forward(state, action, packed, log_prob=False))
    # log_softmax branch
    logp = jax.block_until_ready(
        critic_forward(state, action, packed, log_prob=True))

    ref_probs = critic_ref(state, action, params_f32, log_prob=False)
    ref_logp = critic_ref(state, action, params_f32, log_prob=True)

    assert probs.shape == (BATCH, N_ATOMS)
    assert logp.shape == (BATCH, N_ATOMS)
    # exact f32 normalize -> probabilities sum to 1 to machine precision
    assert jnp.allclose(jnp.sum(probs, axis=-1), 1.0, atol=1e-5)
    # bf16 weights -> relaxed tolerances vs the f32 reference
    assert jnp.allclose(probs, ref_probs, atol=2e-2, rtol=2e-2)
    assert jnp.allclose(logp, ref_logp, atol=5e-2, rtol=5e-2)

    print("KERNEL_OK")
</pallas_src>

<mosaic_0001>
module attributes {stable_mosaic.version = 11 : i64} {
  func.func @critic_kernel(%arg0: i32, %arg1: memref<128x16xf32, #tpu.memory_space<vmem>>, %arg2: memref<128x4xf32, #tpu.memory_space<vmem>>, %arg3: memref<16x256xbf16, #tpu.memory_space<vmem>>, %arg4: memref<1x256xf32, #tpu.memory_space<vmem>>, %arg5: memref<256x256xbf16, #tpu.memory_space<vmem>>, %arg6: memref<8x256xf32, #tpu.memory_space<vmem>>, %arg7: memref<1x256xf32, #tpu.memory_space<vmem>>, %arg8: memref<256x128xbf16, #tpu.memory_space<vmem>>, %arg9: memref<1x128xf32, #tpu.memory_space<vmem>>, %arg10: memref<128x128xbf16, #tpu.memory_space<vmem>>, %arg11: memref<1x128xf32, #tpu.memory_space<vmem>>, %arg12: memref<128x128xf32, #tpu.memory_space<vmem>>) attributes {dimension_semantics = [#tpu.dimension_semantics<parallel>], iteration_bounds = array<i64: 2>, scalar_prefetch = 0 : i64, scratch_operands = 0 : i64, tpu.core_type = #tpu.core_type<tc>, window_params = [{transform_indices = @transform_0, window_bounds = array<i64: 128, 16>}, {transform_indices = @transform_1, window_bounds = array<i64: 128, 4>}, {pipeline_mode = #tpu.pipeline_mode<synchronous>, transform_indices = @transform_2, window_bounds = array<i64: 16, 256>}, {pipeline_mode = #tpu.pipeline_mode<synchronous>, transform_indices = @transform_3, window_bounds = array<i64: 1, 256>}, {pipeline_mode = #tpu.pipeline_mode<synchronous>, transform_indices = @transform_4, window_bounds = array<i64: 256, 256>}, {pipeline_mode = #tpu.pipeline_mode<synchronous>, transform_indices = @transform_5, window_bounds = array<i64: 8, 256>}, {pipeline_mode = #tpu.pipeline_mode<synchronous>, transform_indices = @transform_6, window_bounds = array<i64: 1, 256>}, {pipeline_mode = #tpu.pipeline_mode<synchronous>, transform_indices = @transform_7, window_bounds = array<i64: 256, 128>}, {pipeline_mode = #tpu.pipeline_mode<synchronous>, transform_indices = @transform_8, window_bounds = array<i64: 1, 128>}, {pipeline_mode = #tpu.pipeline_mode<synchronous>, transform_indices = @transform_9, window_bounds = array<i64: 128, 128>}, {pipeline_mode = #tpu.pipeline_mode<synchronous>, transform_indices = @transform_10, window_bounds = array<i64: 1, 128>}, {transform_indices = @transform_11, window_bounds = array<i64: 128, 128>}]} {
    %c0 = arith.constant 0 : index
    %c0_0 = arith.constant 0 : index
    %0 = vector.load %arg1[%c0, %c0_0] : memref<128x16xf32, #tpu.memory_space<vmem>>, vector<128x16xf32>
    %1 = arith.truncf %0 : vector<128x16xf32> to vector<128x16xbf16>
    %c0_1 = arith.constant 0 : index
    %c0_2 = arith.constant 0 : index
    %2 = vector.load %arg3[%c0_1, %c0_2] : memref<16x256xbf16, #tpu.memory_space<vmem>>, vector<16x256xbf16>
    %cst = arith.constant dense<0.000000e+00> : vector<128x256xf32>
    %3 = tpu.matmul %1, %2, %cst {dimension_numbers = #tpu.dot_dimension_numbers<[1], [0], [0], [1], [0, 0, 1, 1], [], []>} : vector<128x16xbf16>, vector<16x256xbf16>, vector<128x256xf32> -> vector<128x256xf32>
    %c0_3 = arith.constant 0 : index
    %c0_4 = arith.constant 0 : index
    %4 = vector.load %arg4[%c0_3, %c0_4] : memref<1x256xf32, #tpu.memory_space<vmem>>, vector<1x256xf32>
    %5 = vector.broadcast %4 : vector<1x256xf32> to vector<128x256xf32>
    %6 = arith.addf %3, %5 : vector<128x256xf32>
    %cst_5 = arith.constant 0.000000e+00 : f32
    %7 = vector.broadcast %cst_5 : f32 to vector<128x256xf32>
    %8 = arith.cmpf ogt, %6, %7 : vector<128x256xf32>
    %cst_6 = arith.constant 0.00999999977 : f32
    %9 = vector.broadcast %cst_6 : f32 to vector<128x256xf32>
    %10 = arith.mulf %9, %6 : vector<128x256xf32>
    %11 = arith.select %8, %6, %10 : vector<128x256xi1>, vector<128x256xf32>
    %12 = arith.truncf %11 : vector<128x256xf32> to vector<128x256xbf16>
    %c0_7 = arith.constant 0 : index
    %c0_8 = arith.constant 0 : index
    %13 = vector.load %arg5[%c0_7, %c0_8] : memref<256x256xbf16, #tpu.memory_space<vmem>>, vector<256x256xbf16>
    %cst_9 = arith.constant dense<0.000000e+00> : vector<128x256xf32>
    %14 = tpu.matmul %12, %13, %cst_9 {dimension_numbers = #tpu.dot_dimension_numbers<[1], [0], [0], [1], [0, 0, 1, 1], [], []>} : vector<128x256xbf16>, vector<256x256xbf16>, vector<128x256xf32> -> vector<128x256xf32>
    %c0_10 = arith.constant 0 : index
    %c0_11 = arith.constant 0 : index
    %15 = vector.load %arg7[%c0_10, %c0_11] : memref<1x256xf32, #tpu.memory_space<vmem>>, vector<1x256xf32>
    %16 = vector.broadcast %15 : vector<1x256xf32> to vector<128x256xf32>
    %17 = arith.addf %14, %16 : vector<128x256xf32>
    %c0_12 = arith.constant 0 : index
    %c0_13 = arith.constant 0 : index
    %18 = vector.load %arg2[%c0_12, %c0_13] : memref<128x4xf32, #tpu.memory_space<vmem>>, vector<128x4xf32>
    %19 = vector.extract_strided_slice %18 {offsets = [0, 0], sizes = [128, 1], strides = [1, 1]} : vector<128x4xf32> to vector<128x1xf32>
    %c0_14 = arith.constant 0 : index
    %c0_15 = arith.constant 0 : index
    %20 = vector.load %arg6[%c0_14, %c0_15] : memref<8x256xf32, #tpu.memory_space<vmem>>, vector<1x256xf32>
    %21 = vector.broadcast %19 : vector<128x1xf32> to vector<128x256xf32>
    %22 = vector.broadcast %20 : vector<1x256xf32> to vector<128x256xf32>
    %23 = arith.mulf %21, %22 : vector<128x256xf32>
    %24 = arith.addf %17, %23 : vector<128x256xf32>
    %25 = vector.extract_strided_slice %18 {offsets = [0, 1], sizes = [128, 1], strides = [1, 1]} : vector<128x4xf32> to vector<128x1xf32>
    %c1 = arith.constant 1 : index
    %c0_16 = arith.constant 0 : index
    %26 = vector.load %arg6[%c1, %c0_16] : memref<8x256xf32, #tpu.memory_space<vmem>>, vector<1x256xf32>
    %27 = vector.broadcast %25 : vector<128x1xf32> to vector<128x256xf32>
    %28 = vector.broadcast %26 : vector<1x256xf32> to vector<128x256xf32>
    %29 = arith.mulf %27, %28 : vector<128x256xf32>
    %30 = arith.addf %24, %29 : vector<128x256xf32>
    %31 = vector.extract_strided_slice %18 {offsets = [0, 2], sizes = [128, 1], strides = [1, 1]} : vector<128x4xf32> to vector<128x1xf32>
    %c2 = arith.constant 2 : index
    %c0_17 = arith.constant 0 : index
    %32 = vector.load %arg6[%c2, %c0_17] : memref<8x256xf32, #tpu.memory_space<vmem>>, vector<1x256xf32>
    %33 = vector.broadcast %31 : vector<128x1xf32> to vector<128x256xf32>
    %34 = vector.broadcast %32 : vector<1x256xf32> to vector<128x256xf32>
    %35 = arith.mulf %33, %34 : vector<128x256xf32>
    %36 = arith.addf %30, %35 : vector<128x256xf32>
    %37 = vector.extract_strided_slice %18 {offsets = [0, 3], sizes = [128, 1], strides = [1, 1]} : vector<128x4xf32> to vector<128x1xf32>
    %c3 = arith.constant 3 : index
    %c0_18 = arith.constant 0 : index
    %38 = vector.load %arg6[%c3, %c0_18] : memref<8x256xf32, #tpu.memory_space<vmem>>, vector<1x256xf32>
    %39 = vector.broadcast %37 : vector<128x1xf32> to vector<128x256xf32>
    %40 = vector.broadcast %38 : vector<1x256xf32> to vector<128x256xf32>
    %41 = arith.mulf %39, %40 : vector<128x256xf32>
    %42 = arith.addf %36, %41 : vector<128x256xf32>
    %cst_19 = arith.constant 0.000000e+00 : f32
    %43 = vector.broadcast %cst_19 : f32 to vector<128x256xf32>
    %44 = arith.cmpf ogt, %42, %43 : vector<128x256xf32>
    %cst_20 = arith.constant 0.00999999977 : f32
    %45 = vector.broadcast %cst_20 : f32 to vector<128x256xf32>
    %46 = arith.mulf %45, %42 : vector<128x256xf32>
    %47 = arith.select %44, %42, %46 : vector<128x256xi1>, vector<128x256xf32>
    %48 = arith.truncf %47 : vector<128x256xf32> to vector<128x256xbf16>
    %c0_21 = arith.constant 0 : index
    %c0_22 = arith.constant 0 : index
    %49 = vector.load %arg8[%c0_21, %c0_22] : memref<256x128xbf16, #tpu.memory_space<vmem>>, vector<256x128xbf16>
    %cst_23 = arith.constant dense<0.000000e+00> : vector<128x128xf32>
    %50 = tpu.matmul %48, %49, %cst_23 {dimension_numbers = #tpu.dot_dimension_numbers<[1], [0], [0], [1], [0, 0, 1, 1], [], []>} : vector<128x256xbf16>, vector<256x128xbf16>, vector<128x128xf32> -> vector<128x128xf32>
    %c0_24 = arith.constant 0 : index
    %c0_25 = arith.constant 0 : index
    %51 = vector.load %arg9[%c0_24, %c0_25] : memref<1x128xf32, #tpu.memory_space<vmem>>, vector<1x128xf32>
    %52 = vector.broadcast %51 : vector<1x128xf32> to vector<128x128xf32>
    %53 = arith.addf %50, %52 : vector<128x128xf32>
    %cst_26 = arith.constant 0.000000e+00 : f32
    %54 = vector.broadcast %cst_26 : f32 to vector<128x128xf32>
    %55 = arith.cmpf ogt, %53, %54 : vector<128x128xf32>
    %cst_27 = arith.constant 0.00999999977 : f32
    %56 = vector.broadcast %cst_27 : f32 to vector<128x128xf32>
    %57 = arith.mulf %56, %53 : vector<128x128xf32>
    %58 = arith.select %55, %53, %57 : vector<128x128xi1>, vector<128x128xf32>
    %59 = arith.truncf %58 : vector<128x128xf32> to vector<128x128xbf16>
    %c0_28 = arith.constant 0 : index
    %c0_29 = arith.constant 0 : index
    %60 = vector.load %arg10[%c0_28, %c0_29] : memref<128x128xbf16, #tpu.memory_space<vmem>>, vector<128x128xbf16>
    %cst_30 = arith.constant dense<0.000000e+00> : vector<128x128xf32>
    %61 = tpu.matmul %59, %60, %cst_30 {dimension_numbers = #tpu.dot_dimension_numbers<[1], [0], [0], [1], [0, 0, 1, 1], [], []>} : vector<128x128xbf16>, vector<128x128xbf16>, vector<128x128xf32> -> vector<128x128xf32>
    %c0_31 = arith.constant 0 : index
    %c0_32 = arith.constant 0 : index
    %62 = vector.load %arg11[%c0_31, %c0_32] : memref<1x128xf32, #tpu.memory_space<vmem>>, vector<1x128xf32>
    %63 = vector.broadcast %62 : vector<1x128xf32> to vector<128x128xf32>
    %64 = arith.addf %61, %63 : vector<128x128xf32>
    %cst_33 = arith.constant dense<0xFF800000> : vector<128xf32>
    %65 = vector.multi_reduction <maximumf>, %64, %cst_33 [1] : vector<128x128xf32> to vector<128xf32>
    %66 = vector.shape_cast %65 : vector<128xf32> to vector<128x1xf32>
    %67 = vector.broadcast %66 : vector<128x1xf32> to vector<128x128xf32>
    %68 = arith.subf %64, %67 : vector<128x128xf32>
    %69 = math.exp %68 : vector<128x128xf32>
    %cst_34 = arith.constant dense<0.000000e+00> : vector<128xf32>
    %70 = vector.multi_reduction <add>, %69, %cst_34 [1] : vector<128x128xf32> to vector<128xf32>
    %71 = vector.shape_cast %70 : vector<128xf32> to vector<128x1xf32>
    %72 = vector.broadcast %71 : vector<128x1xf32> to vector<128x128xf32>
    %73 = arith.divf %69, %72 : vector<128x128xf32>
    %c0_35 = arith.constant 0 : index
    %c0_36 = arith.constant 0 : index
    %74 = vector.load %arg12[%c0_35, %c0_36] : memref<128x128xf32, #tpu.memory_space<vmem>>, vector<128x128xf32>
    tpu.vector_store %arg12[%c0_35, %c0_36], %73 {strides = array<i32>} : memref<128x128xf32, #tpu.memory_space<vmem>>, vector<128x128xf32>,
    return
  }
  func.func @transform_0(%arg0: i32) -> (i32, i32) {
    %c0_i32 = arith.constant 0 : i32
    %c0_i32_0 = arith.constant 0 : i32
    return %arg0, %c0_i32 : i32, i32
  }
  func.func @transform_1(%arg0: i32) -> (i32, i32) {
    %c0_i32 = arith.constant 0 : i32
    %c0_i32_0 = arith.constant 0 : i32
    return %arg0, %c0_i32 : i32, i32
  }
  func.func @transform_2(%arg0: i32) -> (i32, i32) {
    %c0_i32 = arith.constant 0 : i32
    %c0_i32_0 = arith.constant 0 : i32
    %c0_i32_1 = arith.constant 0 : i32
    return %c0_i32, %c0_i32_0 : i32, i32
  }
  func.func @transform_3(%arg0: i32) -> (i32, i32) {
    %c0_i32 = arith.constant 0 : i32
    %c0_i32_0 = arith.constant 0 : i32
    %c0_i32_1 = arith.constant 0 : i32
    return %c0_i32, %c0_i32_0 : i32, i32
  }
  func.func @transform_4(%arg0: i32) -> (i32, i32) {
    %c0_i32 = arith.constant 0 : i32
    %c0_i32_0 = arith.constant 0 : i32
    %c0_i32_1 = arith.constant 0 : i32
    return %c0_i32, %c0_i32_0 : i32, i32
  }
  func.func @transform_5(%arg0: i32) -> (i32, i32) {
    %c0_i32 = arith.constant 0 : i32
    %c0_i32_0 = arith.constant 0 : i32
    %c0_i32_1 = arith.constant 0 : i32
    return %c0_i32, %c0_i32_0 : i32, i32
  }
  func.func @transform_6(%arg0: i32) -> (i32, i32) {
    %c0_i32 = arith.constant 0 : i32
    %c0_i32_0 = arith.constant 0 : i32
    %c0_i32_1 = arith.constant 0 : i32
    return %c0_i32, %c0_i32_0 : i32, i32
  }
  func.func @transform_7(%arg0: i32) -> (i32, i32) {
    %c0_i32 = arith.constant 0 : i32
    %c0_i32_0 = arith.constant 0 : i32
    %c0_i32_1 = arith.constant 0 : i32
    return %c0_i32, %c0_i32_0 : i32, i32
  }
  func.func @transform_8(%arg0: i32) -> (i32, i32) {
    %c0_i32 = arith.constant 0 : i32
    %c0_i32_0 = arith.constant 0 : i32
    %c0_i32_1 = arith.constant 0 : i32
    return %c0_i32, %c0_i32_0 : i32, i32
  }
  func.func @transform_9(%arg0: i32) -> (i32, i32) {
    %c0_i32 = arith.constant 0 : i32
    %c0_i32_0 = arith.constant 0 : i32
    %c0_i32_1 = arith.constant 0 : i32
    return %c0_i32, %c0_i32_0 : i32, i32
  }
  func.func @transform_10(%arg0: i32) -> (i32, i32) {
    %c0_i32 = arith.constant 0 : i32
    %c0_i32_0 = arith.constant 0 : i32
    %c0_i32_1 = arith.constant 0 : i32
    return %c0_i32, %c0_i32_0 : i32, i32
  }
  func.func @transform_11(%arg0: i32) -> (i32, i32) {
    %c0_i32 = arith.constant 0 : i32
    %c0_i32_0 = arith.constant 0 : i32
    return %arg0, %c0_i32 : i32, i32
  }
}

</mosaic_0001>

<bundles_post_ra>
// kernel: tpu_custom_call.1
= control target key start
LH: loop header
LB: loop body
LE: loop exit
PB: predicated region body
PF: predicated region fallthrough
CT: control target
= control target key end

     0   :  { %s4505_s0 = inlined_call_operand.vmem [shape: f32[256,16], index: 0, kind: input, shape index: {}]   ;;  %s4506_s1 = inlined_call_operand.vmem [shape: f32[256,4], index: 1, kind: input, shape index: {}]   ;;  %s4507_s2 = inlined_call_operand.vmem [shape: bf16[16,256], index: 2, kind: input, shape index: {}]   ;;  %s4508_s3 = inlined_call_operand.vmem [shape: f32[1,256], index: 3, kind: input, shape index: {}]   ;;  %s4509_s4 = inlined_call_operand.vmem [shape: bf16[256,256], index: 4, kind: input, shape index: {}]   ;;  %s4510_s5 = inlined_call_operand.vmem [shape: f32[8,256], index: 5, kind: input, shape index: {}]   ;;  %s4511_s6 = inlined_call_operand.vmem [shape: f32[1,256], index: 6, kind: input, shape index: {}]   ;;  %s4512_s7 = inlined_call_operand.vmem [shape: bf16[256,128], index: 7, kind: input, shape index: {}]   ;;  %s4513_s8 = inlined_call_operand.vmem [shape: f32[1,128], index: 8, kind: input, shape index: {}]   ;;  %s4514_s9 = inlined_call_operand.vmem [shape: bf16[128,128], index: 9, kind: input, shape index: {}]   ;;  %s4515_s10 = inlined_call_operand.vmem [shape: f32[1,128], index: 10, kind: input, shape index: {}]   ;;  %s4516_s11 = inlined_call_operand.hbm [shape: f32[256,128], index: 11, kind: output, shape index: {}]  }
   0x1   :  { %4526 = sst [smem:[#allocation88_spill]] %s4505_s0 }
   0x2   :  { %16 = vsyncpa [#allocation3], 0 }
   0x3   :  { %18 = vsyncpa [#allocation3 + $0x1], 0  ;;  %s3006_s17 = smov 0   ;;  %s3008_s18 = smov 0  }
   0x4   :  { %s3010_s19 = smov 0   ;;  %s3012_s20 = smov 0  }
   0x5 LB: > { %s3027_s21 = sadd.s32 4294967295, %s2937_s20   ;;  %s2437_s22 = sadd.s32 4294967294, %s2937_s20   ;;  %s2937_s20 = sphi %s3012_s20, %s4707_s20   ;;  %s2933_s19 = sphi %s3010_s19, %s4706_s19   ;;  %s2929_s18 = sphi %s3008_s18, %s4705_s18   ;;  %s2925_s17 = sphi %s3006_s17, %s4704_s17  }
   0x6   : > { %s3031_s23 = sadd.s32 1, %s2937_s20   ;;  %s272_s24 = sadd.s32 1, %s2933_s19 }
   0x7   : > { %s269_s25 = ssub.s32 %s2937_s20, %s3031_s23  ;;  %p282_p0 = scmp.ne.s32.totalorder %s2933_s19, %s2929_s18 }
   0x8   : > { %p270_p1 = scmp.eq.s32.totalorder %s269_s25, 0  ;;  %p283_p2 = scmp.eq.s32.totalorder %s3027_s21, 1 }
   0x9   : > { %p288_p3 = scmp.ne.s32.totalorder %s2929_s18, %s2925_s17  ;;  %p289_p4 = scmp.eq.s32.totalorder %s2437_s22, 1 }
   0xa   : > { %s3042_s26 = scalar_select %p270_p1, %s2933_s19, %s272_s24  }
   0xb   : > { %p3044_p5 = por %p283_p2, %p282_p0  ;;  %p3048_p6 = por %p289_p4, %p288_p3 }
   0xc   : > { %p2440_p7 = scmp.ge.s32.totalorder %s2937_s20, 1  ;;  %p352_p8 = scmp.lt.s32.totalorder %s2937_s20, 3 }
   0xe   : > { %p353_p9 = pnand %p2440_p7, %p352_p8 }
  0x10   : > { %356 = sbr.rel (%p353_p9) target bundleno = 1326 (0x52e), region = 64 }
  0x17   : > { %v2736_v0 = vld [vmem:[%s4507_s2 + $0x4] ss:$8 sps:$4 sm:$0xff]   ;;  %s2442_s12 = sshll.u32 %s3027_s21, 4  ;;  %v2738_v1 = vld [vmem:[%s4507_s2] ss:$8 sps:$4 sm:$0xff]   ;;  %v2939_v2 = vmov 0  }
  0x18   : > { %516 = vmatprep.mubr.bf16.mxu0 %v2939_v2  ;;  %p398_p10 = scmp.lt.s32.totalorder %s2442_s12, 31  ;;  %484 = vmatprep.subr.bf16.mxu0 %v2736_v0  ;;  %v2739_v3 = vld [vmem:[%s4509_s4 + $0x4] ss:$8 sps:$4 sm:$0xff]   ;;  %v2741_v4 = vld [vmem:[%s4509_s4] ss:$8 sps:$4 sm:$0xff]   ;;  %v2940_v6 = vmov 1  }
  0x19   : > { %485 = vmatpush1.bf16.msra.mxu0 %v2738_v1  ;;  %v2742_v5 = vld [vmem:[%s4509_s4 + $0x14] ss:$8 sps:$4 sm:$0xff]   ;;  %2696 = vset.pattern.permute.xlu1 %v2940_v6  ;;  %v2744_v7 = vld [vmem:[%s4509_s4 + $0x10] ss:$8 sps:$4 sm:$0xff]   ;;  %v2941_v8 = vmov 2   ;;  %s4529_s0 = sld [smem:[#allocation88_spill]] }
  0x1a   : > { %s4709_s12 = smov (!%p398_p10, %s2442_s12), 31  ;;  %913 = vmatprep.subr.bf16.mxu1 %v2739_v3  ;;  %2697 = vset.pattern.permute.xlu0 %v2941_v8  ;;  %v2745_v9 = vld [vmem:[%s4509_s4 + $0x24] ss:$8 sps:$4 sm:$0xff]   ;;  %vm459_vm0 = vcmask 130048   ;;  %v2747_v13 = vld [vmem:[%s4509_s4 + $0x20] ss:$8 sps:$4 sm:$0xff]  }
  0x1b   : > { %s2443_s30 = sshll.u32 %s4709_s12, 3  ;;  %914 = vmatpush1.bf16.msra.mxu1 %v2741_v4  ;;  %v2748_v14 = vld [vmem:[%s4509_s4 + $0x34] ss:$8 sps:$4 sm:$0xff]   ;;  %v2750_v18 = vld [vmem:[%s4509_s4 + $0x30] ss:$8 sps:$4 sm:$0xff]   ;;  %v2942_v34 = vmov 3  }
  0x1c   : > { %915 = vmatprep.subr.bf16.mxu1 %v2742_v5  ;;  %s3092_s15 = scalar_lea.vmem %s4506_s1, %s2443_s30  ;;  %v2751_v19 = vld [vmem:[%s4509_s4 + $0x44] ss:$8 sps:$4 sm:$0xff]   ;;  %v2753_v22 = vld [vmem:[%s4509_s4 + $0x40] ss:$8 sps:$4 sm:$0xff]   ;;  %v2754_v23 = vld [vmem:[%s4509_s4 + $0x54] ss:$8 sps:$4 sm:$0xff]  }
  0x1d   : > { %v3102_v17 = vld [vmem:[%s3092_s15] sm:$0xff]  ;;  %v3112_v21 = vld [vmem:[%s3092_s15 + $0x8] sm:$0xff]  ;;  %v2756_v26 = vld [vmem:[%s4509_s4 + $0x50] ss:$8 sps:$4 sm:$0xff]   ;;  %s2522_s25 = sshll.u32 %s3027_s21, 11  ;;  %s2943_s16 = smov [#allocation2]  }
  0x1e   : > { %1201 = vperm.xlu1 %2696, %v3102_v17   ;;  %1342 = vperm.xlu0 %2697, %v3102_v17   ;;  %v2757_v28 = vld [vmem:[%s4509_s4 + $0x64] ss:$8 sps:$4 sm:$0xff]   ;;  %v3135_v29 = vld [vmem:[%s3092_s15 + $0x18] sm:$0xff]  ;;  %v2759_v31 = vld [vmem:[%s4509_s4 + $0x60] ss:$8 sps:$4 sm:$0xff]   ;;  %s4455_s14 = scalar_lea.hbm %s4516_s11, %s2522_s25  ;;  %s2879_s24 = sshll.u32 %s2943_s16, 4  ;;  %s2880_s24 = int_to_ptr.vmem [resolvable:$false] %s2879_s24 }
  0x1f   : > { %s3079_s22 = scalar_lea.vmem %s4529_s0, %s2443_s30  ;;  %916 = vmatpush1.bf16.msra.mxu1 %v2744_v7  ;;  %v2760_v33 = vld [vmem:[%s4509_s4 + $0x74] ss:$8 sps:$4 sm:$0xff]   ;;  %v2762_v35 = vld [vmem:[%s4509_s4 + $0x70] ss:$8 sps:$4 sm:$0xff]   ;;  %v2763_v36 = vld [vmem:[%s4509_s4 + $0x84] ss:$8 sps:$4 sm:$0xff]  }
  0x20   : > { %v411_v10 = vld [vmem:[%s3079_s22] sm:$0xff]  ;;  %v412_v11 = vld [vmem:[%s3079_s22 + $0x8] sm:$0xff]  ;;  %917 = vmatprep.subr.bf16.mxu1 %v2745_v9  ;;  %v413_v15 = vld [vmem:[%s3079_s22 + $0x10] sm:$0xff]  ;;  %s394_s0 = sand.u32 1, %s2929_s18  }
  0x21   : > { %v427_v12 = vpack.c.bf16 %v412_v11, %v411_v10  ;;  %v414_v16 = vld [vmem:[%s3079_s22 + $0x18] sm:$0xff]  ;;  %v415_v24 = vld [vmem:[%s3079_s22 + $0x20] sm:$0xff]  ;;  %v416_v25 = vld [vmem:[%s3079_s22 + $0x28] sm:$0xff]  ;;  %s2441_s12 = sshll.u32 %s394_s0, 7  ;;  %s4464_s21 = scalar_lea.sflag [#allocation3], %s394_s0 }
  0x22   : > { %v428_v20 = vpack.c.bf16 %v414_v16, %v413_v15  ;;  %1205 = vperm.xlu1 %2696, %v3112_v21   ;;  %v429_v27 = vpack.c.bf16 %v416_v25, %v415_v24  ;;  %1354 = vperm.xlu0 %2697, %v3135_v29   ;;  %v417_v30 = vld [vmem:[%s3079_s22 + $0x30] sm:$0xff]  ;;  %v418_v32 = vld [vmem:[%s3079_s22 + $0x38] sm:$0xff]  ;;  %v2765_v39 = vld [vmem:[%s4509_s4 + $0x80] ss:$8 sps:$4 sm:$0xff]   ;;  %s4420_s30 = scalar_lea.vmem [#allocation2], %s2441_s12  ;;  %s2881_s12 = scalar_lea.vmem %s2880_s24, 4096 }
  0x23   : > { %2448 = vmatmul.mubr.msk.bf16.vlgmr.msra.gmra.mrb[0].mxu0 %vm459_vm0, %v427_v12  ;;  %918 = vmatpush1.bf16.msra.mxu1 %v2747_v13  ;;  %v3157_v37 = vld [vmem:[%s3092_s15 + $0x10] sm:$0xff]  ;;  %v430_v38 = vpack.c.bf16 %v418_v32, %v417_v30  ;;  %v419_v41 = vld [vmem:[%s3079_s22 + $0x40] sm:$0xff]  ;;  %v420_v42 = vld [vmem:[%s3079_s22 + $0x48] sm:$0xff]  ;;  %s2363_s29 = sshll.u32 %s4420_s30, 4  ;;  %s4457_s29 = int_to_ptr.vmem [resolvable:$true] %s2363_s29 }
  0x24   : > { %526 = vmatprep.mubr.bf16.mxu0 %v2939_v2  ;;  %919 = vmatprep.subr.bf16.mxu1 %v2748_v14  ;;  %v2766_v40 = vld [vmem:[%s4509_s4 + $0x94] ss:$8 sps:$4 sm:$0xff]   ;;  %v2768_v43 = vld [vmem:[%s4509_s4 + $0x90] ss:$8 sps:$4 sm:$0xff]   ;;  %v2769_v44 = vld [vmem:[%s4509_s4 + $0xa4] ss:$8 sps:$4 sm:$0xff]   ;;  %v431_v45 = vpack.c.bf16 %v420_v42, %v419_v41  ;;  %p2882_p0 = scmp.lt.s32.totalorder %s4457_s29, %s2880_s24 }
  0x25   : > { %v2771_v46 = vld [vmem:[%s4509_s4 + $0xa0] ss:$8 sps:$4 sm:$0xff]   ;;  %v2772_v47 = vld [vmem:[%s4509_s4 + $0xb4] ss:$8 sps:$4 sm:$0xff]   ;;  %v2774_v50 = vld [vmem:[%s4509_s4 + $0xb0] ss:$8 sps:$4 sm:$0xff]  }
  0x26   : > { %2698 = vset.pattern.permute.xlu1 %v2941_v8  ;;  %2703 = vset.pattern.permute.xlu0 %v2942_v34  ;;  %v421_v48 = vld [vmem:[%s3079_s22 + $0x50] sm:$0xff]  ;;  %v422_v49 = vld [vmem:[%s3079_s22 + $0x58] sm:$0xff]  ;;  %v2775_v52 = vld [vmem:[%s4509_s4 + $0xc4] ss:$8 sps:$4 sm:$0xff]  }
  0x27   : > { %920 = vmatpush1.bf16.msra.mxu1 %v2750_v18  ;;  %1346 = vperm.xlu1 %2698, %v3112_v21   ;;  %v432_v51 = vpack.c.bf16 %v422_v49, %v421_v48  ;;  %v2777_v53 = vld [vmem:[%s4509_s4 + $0xc0] ss:$8 sps:$4 sm:$0xff]   ;;  %v2778_v54 = vld [vmem:[%s4509_s4 + $0xd4] ss:$8 sps:$4 sm:$0xff]   ;;  %v2780_v61 = vld [vmem:[%s4509_s4 + $0xd0] ss:$8 sps:$4 sm:$0xff]  }
  0x28   : > { %921 = vmatprep.subr.bf16.mxu1 %v2751_v19  ;;  %1487 = vperm.xlu0 %2703, %v3112_v21   ;;  %v423_v55 = vld [vmem:[%s3079_s22 + $0x60] sm:$0xff]  ;;  %v424_v56 = vld [vmem:[%s3079_s22 + $0x68] sm:$0xff]  ;;  %v425_v58 = vld [vmem:[%s3079_s22 + $0x70] sm:$0xff] }
  0x29   : > { %v433_v57 = vpack.c.bf16 %v424_v56, %v423_v55  ;;  %v426_v59 = vld [vmem:[%s3079_s22 + $0x78] sm:$0xff]  ;;  %v2781_v62 = vld [vmem:[%s4509_s4 + $0xe4] ss:$8 sps:$4 sm:$0xff]   ;;  %v2783_v63 = vld [vmem:[%s4509_s4 + $0xe0] ss:$8 sps:$4 sm:$0xff]   ;;  %s2875_s22 = scalar_lea.vmem %s4457_s29, 2048 }
  0x2a   : > { %v434_v60 = vpack.c.bf16 %v426_v59, %v425_v58  ;;  %v2784_v0 = vld [vmem:[%s4509_s4 + $0xf4] ss:$8 sps:$4 sm:$0xff]   ;;  %v2786_v1 = vld [vmem:[%s4509_s4 + $0xf0] ss:$8 sps:$4 sm:$0xff]   ;;  %v1031_v3 = vld [vmem:[%s3092_s15 + $0x28] sm:$0xff]  ;;  %p2876_p11 = scmp.ne.s32.totalorder %s4457_s29, %s2875_s22  ;;  %p2883_p1 = scmp.lt.s32.totalorder %s2881_s12, %s2875_s22 }
  0x2b   : > { %2449 = vmatmul.mubr.msk.bf16.gmra.mrb[4].mxu0 %vm459_vm0, %v428_v20  ;;  %922 = vmatpush1.bf16.msra.mxu1 %v2753_v22  ;;  %v1030_v4 = vld [vmem:[%s3092_s15 + $0x20] sm:$0xff]  ;;  %v3241_v5 = vld [vmem:[%s3092_s15 + $0x30] sm:$0xff]  ;;  %v1033_v7 = vld [vmem:[%s3092_s15 + $0x38] sm:$0xff] }
  0x2c   : > { %536 = vmatprep.mubr.bf16.mxu0 %v2939_v2  ;;  %923 = vmatprep.subr.bf16.mxu1 %v2754_v23  ;;  %v1034_v9 = vld [vmem:[%s3092_s15 + $0x40] sm:$0xff]  ;;  %v1035_v10 = vld [vmem:[%s3092_s15 + $0x48] sm:$0xff]  ;;  %v1037_v11 = vld [vmem:[%s3092_s15 + $0x58] sm:$0xff]  ;;  %p2877_p12 = pnand %p2876_p11, %p3044_p5  ;;  %p2884_p2 = por %p2883_p1, %p2882_p0 }
  0x2d   : > { %2699 = vset.pattern.permute.xlu1 %v2942_v34  ;;  %1499 = vperm.xlu0 %2703, %v1030_v4   ;;  %v2787_v12 = vld [vmem:[%s4512_s7 + $0x40] sm:$0xff]   ;;  %v2789_v14 = vld [vmem:[%s4512_s7 + $0x48] sm:$0xff]   ;;  %v2791_v16 = vld [vmem:[%s4512_s7 + $0x50] sm:$0xff]  }
  0x2e   : > { %1483 = vperm.xlu1 %2699, %v3102_v17   ;;  %v2788_v13 = vld [vmem:[%s4512_s7] sm:$0xff]   ;;  %2523 = vmatprep.subr.bf16.mxu0 %v2787_v12  ;;  %v2790_v15 = vld [vmem:[%s4512_s7 + $0x8] sm:$0xff]   ;;  %v2793_v18 = vld [vmem:[%s4512_s7 + $0x58] sm:$0xff]   ;;  %p2878_p13 = pneg %p2877_p12 }
  0x2f   : > { %924 = vmatpush1.bf16.msra.mxu1 %v2756_v26  ;;  %2524 = vmatpush3.bf16.msra.mxu0 %v2788_v13  ;;  %v2794_v19 = vld [vmem:[%s4512_s7 + $0x18] sm:$0xff]   ;;  %v2795_v20 = vld [vmem:[%s4512_s7 + $0x60] sm:$0xff]   ;;  %v2797_v23 = vld [vmem:[%s4512_s7 + $0x68] sm:$0xff]  }
  0x30   : > { %925 = vmatprep.subr.bf16.mxu1 %v2757_v28  ;;  %2525 = vmatprep.subr.bf16.mxu0 %v2789_v14  ;;  %v2796_v22 = vld [vmem:[%s4512_s7 + $0x20] sm:$0xff]   ;;  %v1039_v24 = vld [vmem:[%s3092_s15 + $0x68] sm:$0xff]  ;;  %p2885_p3 = pnand %p2884_p2, %p2878_p13 }
  0x31   : > { %1511 = vperm.xlu0 %2703, %v1033_v7   ;;  %v2798_v25 = vld [vmem:[%s4512_s7 + $0x28] sm:$0xff]   ;;  %v1038_v26 = vld [vmem:[%s3092_s15 + $0x60] sm:$0xff] }
  0x32   : > { %2700 = vset.pattern.permute.xlu1 %v2939_v2 }
  0x33   : > { %2450 = vmatmul.mubr.msk.bf16.gmra.mrb[8].mxu0 %vm459_vm0, %v429_v27  ;;  %926 = vmatpush1.bf16.msra.mxu1 %v2759_v31  ;;  %v439_v27 = vlaneseq  ;;  %v437_v31 = vld [vmem:[%s4508_s3] sm:$0x3] }
  0x34   : > { %546 = vmatprep.mubr.bf16.mxu0 %v2939_v2  ;;  %927 = vmatprep.subr.bf16.mxu1 %v2760_v33 }
  0x35   : > { %1055 = vperm.xlu1 %2700, %v3157_v37   ;;  %2713 = vset.pattern.permute.xlu0 %v2940_v6  ;;  %v440_v28 = vshrl.u32 %v439_v27, 7 }
  0x36   : > { %1209 = vperm.xlu0 %2713, %v3157_v37   ;;  %2526 = vmatpush3.bf16.msra.mxu0 %v2790_v15 }
  0x37   : > { %928 = vmatpush1.bf16.msra.mxu1 %v2762_v35  ;;  %2527 = vmatprep.subr.bf16.mxu0 %v2791_v16  ;;  %v3314_v30 = vsub.s32 0, %v440_v28  ;;  %v3320_v32 = vsub.s32 1, %v440_v28  ;;  %v3327_v35 = vld [vmem:[%s3092_s15 + $0x78] sm:$0xff] }
  0x38   : > { %929 = vmatprep.subr.bf16.mxu1 %v2763_v36 }
  0x39   : > { %1060 = vperm.xlu1 %2700, %v3135_v29   ;;  %v3324_v33 = vrot.slane %v437_v31, %v3314_v30  ;;  %v3331_v36 = vrot.slane %v437_v31, %v3320_v32 }
  0x3a   : > { %1221 = vperm.xlu0 %2713, %v1031_v3  }
  0x3b   : > { %2451 = vmatmul.mubr.msk.bf16.gmra.mrb[12].mxu0 %vm459_vm0, %v430_v38  ;;  %930 = vmatpush1.bf16.msra.mxu1 %v2765_v39 }
  0x3c   : > { %556 = vmatprep.mubr.bf16.mxu0 %v2939_v2  ;;  %931 = vmatprep.subr.bf16.mxu1 %v2766_v40 }
  0x3d   : > { %2701 = vset.pattern.permute.xlu1 %v2940_v6 }
  0x3e   : > { %1213 = vperm.xlu1 %2701, %v3135_v29   ;;  %1233 = vperm.xlu0 %2713, %v1034_v9  }
  0x3f   : > { %932 = vmatpush1.bf16.msra.mxu1 %v2768_v43 }
  0x40   : > { %933 = vmatprep.subr.bf16.mxu1 %v2769_v44 }
  0x42   : > { %2702 = vset.pattern.permute.xlu1 %v2941_v8  ;;  %1245 = vperm.xlu0 %2713, %v1037_v11  }
  0x43   : > { %2452 = vmatmul.mubr.msk.bf16.gmra.mrb[16].mxu0 %vm459_vm0, %v431_v45  ;;  %934 = vmatpush1.bf16.msra.mxu1 %v2771_v46 }
  0x44   : > { %566 = vmatprep.mubr.bf16.mxu0 %v2939_v2  ;;  %935 = vmatprep.subr.bf16.mxu1 %v2772_v47 }
  0x45   : > { %1350 = vperm.xlu1 %2702, %v3157_v37  }
  0x46   : > { %2720 = vset.pattern.permute.xlu0 %v2939_v2 }
  0x47   : > { %936 = vmatpush1.bf16.msra.mxu1 %v2774_v50  ;;  %1045 = vperm.xlu0 %2720, %v3102_v17   ;;  %v2792_v17 = vld [vmem:[%s4512_s7 + $0x10] sm:$0xff]  }
  0x48   : > { %937 = vmatprep.subr.bf16.mxu1 %v2775_v52  ;;  %2528 = vmatpush3.bf16.msra.mxu0 %v2792_v17 }
  0x49   : > { %2704 = vset.pattern.permute.xlu1 %v2942_v34  ;;  %2529 = vmatprep.subr.bf16.mxu0 %v2793_v18 }
  0x4a   : > { %1491 = vperm.xlu1 %2704, %v3157_v37  }
  0x4b   : > { %2453 = vmatmul.mubr.msk.bf16.gmra.mrb[20].mxu0 %vm459_vm0, %v432_v51  ;;  %938 = vmatpush1.bf16.msra.mxu1 %v2777_v53 }
  0x4c   : > { %576 = vmatprep.mubr.bf16.mxu0 %v2939_v2  ;;  %939 = vmatprep.subr.bf16.mxu1 %v2778_v54 }
  0x4d   : > { %1050 = vperm.xlu0 %2720, %v3112_v21   ;;  %v1036_v21 = vld [vmem:[%s3092_s15 + $0x50] sm:$0xff]  ;;  %2530 = vmatpush3.bf16.msra.mxu0 %v2794_v19 }
  0x4e   : > { %1495 = vperm.xlu1 %2704, %v3135_v29   ;;  %2531 = vmatprep.subr.bf16.mxu0 %v2795_v20  ;;  %v3311_v29 = vld [vmem:[%s3092_s15 + $0x70] sm:$0xff] }
  0x4f   : > { %940 = vmatpush1.bf16.msra.mxu1 %v2780_v61 }
  0x50   : > { %941 = vmatprep.subr.bf16.mxu1 %v2781_v62 }
  0x51   : > { %1065 = vperm.xlu0 %2720, %v1030_v4   ;;  %2532 = vmatpush3.bf16.msra.mxu0 %v2796_v22 }
  0x52   : > { %2705 = vset.pattern.permute.xlu1 %v2939_v2  ;;  %2533 = vmatprep.subr.bf16.mxu0 %v2797_v23 }
  0x53   : > { %2454 = vmatmul.mubr.msk.bf16.gmra.mrb[24].mxu0 %vm459_vm0, %v433_v57  ;;  %942 = vmatpush1.bf16.msra.mxu1 %v2783_v63 }
  0x54   : > { %586 = vmatprep.mubr.bf16.mxu0 %v2939_v2  ;;  %943 = vmatprep.subr.bf16.mxu1 %v2784_v0 }
  0x55   : > { %1070 = vperm.xlu1 %2705, %v1031_v3   ;;  %1080 = vperm.xlu0 %2720, %v1033_v7  }
  0x56   : > { %2534 = vmatpush3.bf16.msra.mxu0 %v2798_v25 }
  0x57   : > { %944 = vmatpush1.bf16.msra.mxu1 %v2786_v1 }
  0x59   : > { %2706 = vset.pattern.permute.xlu1 %v2940_v6  ;;  %1095 = vperm.xlu0 %2720, %v1036_v21  }
  0x5a   : > { %1217 = vperm.xlu1 %2706, %v1030_v4  }
  0x5b   : > { %2455 = vmatmul.mubr.msk.bf16.gmra.mrb[28].mxu0 %vm459_vm0, %v434_v60 }
  0x5d   : > { %1110 = vperm.xlu0 %2720, %v1039_v24  }
  0x5e   : > { %2707 = vset.pattern.permute.xlu1 %v2941_v8 }
  0x5f   : > { %1358 = vperm.xlu1 %2707, %v1030_v4  }
  0x61   : > { %2724 = vset.pattern.permute.xlu0 %v2941_v8 }
  0x62   : > { %1366 = vperm.xlu0 %2724, %v3241_v5  }
  0x63   : > { %1362 = vperm.xlu1 %2707, %v1031_v3  }
  0x66   : > { %1378 = vperm.xlu0 %2724, %v1035_v10  }
  0x67   : > { %2708 = vset.pattern.permute.xlu1 %v2942_v34 }
  0x68   : > { %1503 = vperm.xlu1 %2708, %v1031_v3  }
  0x6a   : > { %1390 = vperm.xlu0 %2724, %v1038_v26  }
  0x6c   : > { %2709 = vset.pattern.permute.xlu1 %v2939_v2 }
  0x6d   : > { %1075 = vperm.xlu1 %2709, %v3241_v5  }
  0x6e   : > { %2726 = vset.pattern.permute.xlu0 %v2942_v34 }
  0x6f   : > { %1523 = vperm.xlu0 %2726, %v1036_v21  }
  0x71   : > { %2710 = vset.pattern.permute.xlu1 %v2940_v6 }
  0x72   : > { %1225 = vperm.xlu1 %2710, %v3241_v5  }
  0x73   : > { %1535 = vperm.xlu0 %2726, %v1039_v24  }
  0x76   : > { %1229 = vperm.xlu1 %2710, %v1033_v7  }
  0x77   : > { %2730 = vset.pattern.permute.xlu0 %v2940_v6 }
  0x78   : > { %1257 = vperm.xlu0 %2730, %v3311_v29  }
  0x7a   : > { %2711 = vset.pattern.permute.xlu1 %v2941_v8 }
  0x7b   : > { %1370 = vperm.xlu1 %2711, %v1033_v7  }
  0x7c   : > { %2733 = vset.pattern.permute.xlu0 %v2941_v8 }
  0x7d   : > { %1402 = vperm.xlu0 %2733, %v3327_v35  }
  0x7f   : > { %2712 = vset.pattern.permute.xlu1 %v2942_v34 }
  0x80   : > { %1507 = vperm.xlu1 %2712, %v3241_v5  }
  0x81   : > { %2735 = vset.pattern.permute.xlu0 %v2942_v34 }
  0x84   : > { %2714 = vset.pattern.permute.xlu1 %v2939_v2 }
  0x85   : > { %1085 = vperm.xlu1 %2714, %v1034_v9  }
  0x89   : > { %1090 = vperm.xlu1 %2714, %v1035_v10  }
  0x8d   : > { %2715 = vset.pattern.permute.xlu1 %v2940_v6 }
  0x8e   : > { %1237 = vperm.xlu1 %2715, %v1035_v10  }
  0x92   : > { %2716 = vset.pattern.permute.xlu1 %v2941_v8 }
  0x93   : > { %1374 = vperm.xlu1 %2716, %v1034_v9  }
  0x97   : > { %2717 = vset.pattern.permute.xlu1 %v2942_v34 }
  0x98   : > { %1515 = vperm.xlu1 %2717, %v1034_v9  }
  0x9c   : > { %1519 = vperm.xlu1 %2717, %v1035_v10  }
  0x9d   : > { %v3337_v42 = vpop.permute.xlu1 %1201 }
  0xa0   : > { %2718 = vset.pattern.permute.xlu1 %v2939_v2 }
  0xa1   : > { %1100 = vperm.xlu1 %2718, %v1037_v11   ;;  %v3344_v56 = vpop.permute.xlu1 %1205 }
  0xa5   : > { %2719 = vset.pattern.permute.xlu1 %v2940_v6 }
  0xa6   : > { %1241 = vperm.xlu1 %2719, %v1036_v21   ;;  %v3351_v3 = vpop.permute.xlu1 %1346 }
  0xaa   : > { %2721 = vset.pattern.permute.xlu1 %v2941_v8 }
  0xab   : > { %1382 = vperm.xlu1 %2721, %v1036_v21  }
  0xad   : > { %v3357_v19 = vpop.permute.xlu1 %1483 }
  0xaf   : > { %1386 = vperm.xlu1 %2721, %v1037_v11  }
  0xb3   : > { %2722 = vset.pattern.permute.xlu1 %v2942_v34 }
  0xb4   : > { %1527 = vperm.xlu1 %2722, %v1037_v11  }
  0xb8   : > { %2723 = vset.pattern.permute.xlu1 %v2939_v2 }
  0xb9   : > { %1105 = vperm.xlu1 %2723, %v1038_v26  }
  0xbd   : > { %2725 = vset.pattern.permute.xlu1 %v2940_v6 }
  0xbe   : > { %1249 = vperm.xlu1 %2725, %v1038_v26  }
  0xc2   : > { %1253 = vperm.xlu1 %2725, %v1039_v24  }
  0xc6   : > { %2727 = vset.pattern.permute.xlu1 %v2941_v8 }
  0xc7   : > { %1394 = vperm.xlu1 %2727, %v1039_v24  }
  0xcb   : > { %2728 = vset.pattern.permute.xlu1 %v2942_v34 }
  0xcc   : > { %1531 = vperm.xlu1 %2728, %v1038_v26  }
  0xd0   : > { %2729 = vset.pattern.permute.xlu1 %v2939_v2 }
  0xd1   : > { %1115 = vperm.xlu1 %2729, %v3311_v29  }
  0xd5   : > { %1120 = vperm.xlu1 %2729, %v3327_v35  }
  0xd9   : > { %2731 = vset.pattern.permute.xlu1 %v2940_v6 }
  0xda   : > { %1261 = vperm.xlu1 %2731, %v3327_v35  }
  0xde   : > { %2732 = vset.pattern.permute.xlu1 %v2941_v8 }
  0xdf   : > { %1398 = vperm.xlu1 %2732, %v3311_v29  }
  0xe3   : > { %2734 = vset.pattern.permute.xlu1 %v2942_v34 }
  0xe4   : > { %1539 = vperm.xlu1 %2734, %v3311_v29  }
  0xe8   : > { %1543 = vperm.xlu1 %2734, %v3327_v35  }
  0xf6   : > { %v518_v37 = vpop.f32.mrb[0].mxu0 }
  0xf7   : > { %v519_v38 = vadd.f32 %v518_v37, %v3324_v33  ;;  %v520_v39 = vpop.f32.mrb[1].mxu0 }
  0xf8   : > { %v521_v40 = vadd.f32 %v520_v39, %v3331_v36  ;;  %v522_v41 = vpop.f32.mrb[2].mxu0  ;;  %v3363_v39 = vpop.permute.xlu1 %1055 }
  0xf9   : > { %v629_v43 = vmul.f32 0.01, %v519_v38  ;;  %v523_v44 = vadd.f32 %v522_v41, %v3324_v33  ;;  %v524_v45 = vpop.f32.mrb[3].mxu0  ;;  %vm597_vm1 = vcmp.gt.f32.partialorder %v519_v38, 0.0 }
  0xfa   : > { %v630_v46 = vmul.f32 0.01, %v521_v40  ;;  %v525_v47 = vadd.f32 %v524_v45, %v3331_v36  ;;  %vm598_vm3 = vcmp.gt.f32.partialorder %v521_v40, 0.0 }
  0xfb   : > { %vm599_vm2 = vcmp.gt.f32.partialorder %v523_v44, 0.0  ;;  %v631_v48 = vmul.f32 0.01, %v523_v44  ;;  %v661_v50 = vsel %vm597_vm1, %v519_v38, %v629_v43 }
  0xfc   : > { %v632_v49 = vmul.f32 0.01, %v525_v47  ;;  %vm600_vm4 = vcmp.gt.f32.partialorder %v525_v47, 0.0  ;;  %v662_v53 = vsel %vm598_vm3, %v521_v40, %v630_v46 }
  0xfd   : > { %v663_v51 = vsel %vm599_vm2, %v523_v44, %v631_v48 }
  0xfe   : > { %v528_v52 = vpop.f32.mrb[4].mxu0  ;;  %v664_v54 = vsel %vm600_vm4, %v525_v47, %v632_v49  ;;  %v693_v55 = vpack.c.bf16 %v663_v51, %v661_v50  ;;  %v3372_v50 = vpop.permute.xlu1 %1060 }
  0xff   : > { %v529_v57 = vadd.f32 %v528_v52, %v3324_v33  ;;  %v530_v58 = vpop.f32.mrb[5].mxu0  ;;  %v694_v59 = vpack.c.bf16 %v664_v54, %v662_v53 }
 0x100   : > { %v531_v60 = vadd.f32 %v530_v58, %v3331_v36  ;;  %v532_v61 = vpop.f32.mrb[6].mxu0 }
 0x101   : > { %v633_v2 = vmul.f32 0.01, %v529_v57  ;;  %v533_v62 = vadd.f32 %v532_v61, %v3324_v33  ;;  %v534_v63 = vpop.f32.mrb[7].mxu0  ;;  %945 = vmatprep.mubr.bf16.mxu1 %v694_v59  ;;  %vm601_vm5 = vcmp.gt.f32.partialorder %v529_v57, 0.0 }
 0x102   : > { %v634_v0 = vmul.f32 0.01, %v531_v60  ;;  %v535_v1 = vadd.f32 %v534_v63, %v3331_v36  ;;  %946 = vmatmul.mubr.bf16.vlgmr.msra.gmra.mrb[0].mxu1 %v693_v55  ;;  %vm602_vm6 = vcmp.gt.f32.partialorder %v531_v60, 0.0 }
 0x103   : > { %vm603_vm7 = vcmp.gt.f32.partialorder %v533_v62, 0.0  ;;  %v635_v4 = vmul.f32 0.01, %v533_v62  ;;  %v665_v7 = vsel %vm601_vm5, %v529_v57, %v633_v2 }
 0x104   : > { %vm604_vm8 = vcmp.gt.f32.partialorder %v535_v1, 0.0  ;;  %v636_v5 = vmul.f32 0.01, %v535_v1  ;;  %v666_v11 = vsel %vm602_vm6, %v531_v60, %v634_v0 }
 0x105   : > { %v667_v9 = vsel %vm603_vm7, %v533_v62, %v635_v4  ;;  %v3376_v62 = vpop.permute.xlu1 %1213 }
 0x106   : > { %v538_v10 = vpop.f32.mrb[8].mxu0  ;;  %v668_v12 = vsel %vm604_vm8, %v535_v1, %v636_v5  ;;  %v695_v13 = vpack.c.bf16 %v667_v9, %v665_v7 }
 0x107   : > { %v539_v14 = vadd.f32 %v538_v10, %v3324_v33  ;;  %v540_v15 = vpop.f32.mrb[9].mxu0  ;;  %v696_v16 = vpack.c.bf16 %v668_v12, %v666_v11 }
 0x108   : > { %v541_v17 = vadd.f32 %v540_v15, %v3331_v36  ;;  %v542_v18 = vpop.f32.mrb[10].mxu0 }
 0x109   : > { %v637_v20 = vmul.f32 0.01, %v539_v14  ;;  %v543_v6 = vadd.f32 %v542_v18, %v3324_v33  ;;  %v544_v21 = vpop.f32.mrb[11].mxu0  ;;  %955 = vmatprep.mubr.bf16.mxu1 %v696_v16  ;;  %vm605_vm9 = vcmp.gt.f32.partialorder %v539_v14, 0.0  ;;  %v3380_v15 = vpop.permute.xlu1 %1350 }
 0x10a   : > { %v638_v22 = vmul.f32 0.01, %v541_v17  ;;  %v545_v23 = vadd.f32 %v544_v21, %v3331_v36  ;;  %956 = vmatmul.mubr.bf16.gmra.mrb[4].mxu1 %v695_v13  ;;  %vm606_vm10 = vcmp.gt.f32.partialorder %v541_v17, 0.0 }
 0x10b   : > { %vm607_vm11 = vcmp.gt.f32.partialorder %v543_v6, 0.0  ;;  %v639_v24 = vmul.f32 0.01, %v543_v6  ;;  %v669_v26 = vsel %vm605_vm9, %v539_v14, %v637_v20 }
 0x10c   : > { %vm608_vm12 = vcmp.gt.f32.partialorder %v545_v23, 0.0  ;;  %v640_v25 = vmul.f32 0.01, %v545_v23  ;;  %v670_v31 = vsel %vm606_vm10, %v541_v17, %v638_v22 }
 0x10d   : > { %v671_v27 = vsel %vm607_vm11, %v543_v6, %v639_v24 }
 0x10e   : > { %v548_v28 = vpop.f32.mrb[12].mxu0  ;;  %v672_v37 = vsel %vm608_vm12, %v545_v23, %v640_v25  ;;  %v697_v38 = vpack.c.bf16 %v671_v27, %v669_v26 }
 0x10f   : > { %v549_v8 = vadd.f32 %v548_v28, %v3324_v33  ;;  %v550_v40 = vpop.f32.mrb[13].mxu0  ;;  %v698_v41 = vpack.c.bf16 %v672_v37, %v670_v31  ;;  %v3386_v28 = vpop.permute.xlu1 %1491 }
 0x110   : > { %v551_v43 = vadd.f32 %v550_v40, %v3331_v36  ;;  %v552_v44 = vpop.f32.mrb[14].mxu0 }
 0x111   : > { %v641_v45 = vmul.f32 0.01, %v549_v8  ;;  %v553_v46 = vadd.f32 %v552_v44, %v3324_v33  ;;  %v554_v47 = vpop.f32.mrb[15].mxu0  ;;  %965 = vmatprep.mubr.bf16.mxu1 %v698_v41  ;;  %vm609_vm13 = vcmp.gt.f32.partialorder %v549_v8, 0.0 }
 0x112   : > { %v642_v48 = vmul.f32 0.01, %v551_v43  ;;  %v555_v49 = vadd.f32 %v554_v47, %v3331_v36  ;;  %966 = vmatmul.mubr.bf16.gmra.mrb[8].mxu1 %v697_v38  ;;  %vm610_vm14 = vcmp.gt.f32.partialorder %v551_v43, 0.0 }
 0x113   : > { %vm611_vm15 = vcmp.gt.f32.partialorder %v553_v46, 0.0  ;;  %v643_v34 = vmul.f32 0.01, %v553_v46  ;;  %v673_v51 = vsel %vm609_vm13, %v549_v8, %v641_v45 }
 0x114   : > { %vm612_vm0 = vcmp.gt.f32.partialorder %v555_v49, 0.0  ;;  %v644_v29 = vmul.f32 0.01, %v555_v49  ;;  %v674_v54 = vsel %vm610_vm14, %v551_v43, %v642_v48 }
 0x115   : > { %v675_v52 = vsel %vm611_vm15, %v553_v46, %v643_v34 }
 0x116   : > { %v558_v53 = vpop.f32.mrb[16].mxu0  ;;  %v676_v55 = vsel %vm612_vm0, %v555_v49, %v644_v29  ;;  %v699_v57 = vpack.c.bf16 %v675_v52, %v673_v51  ;;  %v3392_v52 = vpop.permute.xlu1 %1495 }
 0x117   : > { %v559_v58 = vadd.f32 %v558_v53, %v3324_v33  ;;  %v560_v59 = vpop.f32.mrb[17].mxu0  ;;  %v700_v60 = vpack.c.bf16 %v676_v55, %v674_v54 }
 0x118   : > { %v561_v61 = vadd.f32 %v560_v59, %v3331_v36  ;;  %v562_v2 = vpop.f32.mrb[18].mxu0 }
 0x119   : > { %v645_v35 = vmul.f32 0.01, %v559_v58  ;;  %v563_v63 = vadd.f32 %v562_v2, %v3324_v33  ;;  %v564_v0 = vpop.f32.mrb[19].mxu0  ;;  %975 = vmatprep.mubr.bf16.mxu1 %v700_v60  ;;  %vm613_vm1 = vcmp.gt.f32.partialorder %v559_v58, 0.0 }
 0x11a   : > { %v646_v1 = vmul.f32 0.01, %v561_v61  ;;  %v565_v4 = vadd.f32 %v564_v0, %v3331_v36  ;;  %976 = vmatmul.mubr.bf16.gmra.mrb[12].mxu1 %v699_v57  ;;  %vm614_vm2 = vcmp.gt.f32.partialorder %v561_v61, 0.0  ;;  %v3394_v2 = vpop.permute.xlu1 %1070 }
 0x11b   : > { %vm615_vm3 = vcmp.gt.f32.partialorder %v563_v63, 0.0  ;;  %v647_v5 = vmul.f32 0.01, %v563_v63  ;;  %v677_v9 = vsel %vm613_vm1, %v559_v58, %v645_v35 }
 0x11c   : > { %vm616_vm4 = vcmp.gt.f32.partialorder %v565_v4, 0.0  ;;  %v648_v7 = vmul.f32 0.01, %v565_v4  ;;  %v678_v12 = vsel %vm614_vm2, %v561_v61, %v646_v1 }
 0x11d   : > { %v679_v10 = vsel %vm615_vm3, %v563_v63, %v647_v5 }
 0x11e   : > { %v568_v11 = vpop.f32.mrb[20].mxu0  ;;  %v680_v13 = vsel %vm616_vm4, %v565_v4, %v648_v7  ;;  %v701_v14 = vpack.c.bf16 %v679_v10, %v677_v9 }
 0x11f   : > { %v569_v16 = vadd.f32 %v568_v11, %v3324_v33  ;;  %v570_v17 = vpop.f32.mrb[21].mxu0  ;;  %v702_v18 = vpack.c.bf16 %v680_v13, %v678_v12 }
 0x120   : > { %v571_v20 = vadd.f32 %v570_v17, %v3331_v36  ;;  %v572_v6 = vpop.f32.mrb[22].mxu0 }
 0x121   : > { %v649_v21 = vmul.f32 0.01, %v569_v16  ;;  %v573_v22 = vadd.f32 %v572_v6, %v3324_v33  ;;  %v574_v23 = vpop.f32.mrb[23].mxu0  ;;  %985 = vmatprep.mubr.bf16.mxu1 %v702_v18  ;;  %vm617_vm5 = vcmp.gt.f32.partialorder %v569_v16, 0.0 }
 0x122   : > { %v650_v24 = vmul.f32 0.01, %v571_v20  ;;  %v575_v25 = vadd.f32 %v574_v23, %v3331_v36  ;;  %986 = vmatmul.mubr.bf16.gmra.mrb[16].mxu1 %v701_v14  ;;  %vm618_vm6 = vcmp.gt.f32.partialorder %v571_v20, 0.0  ;;  %v3400_v14 = vpop.permute.xlu1 %1217 }
 0x123   : > { %vm619_vm7 = vcmp.gt.f32.partialorder %v573_v22, 0.0  ;;  %v651_v26 = vmul.f32 0.01, %v573_v22  ;;  %v681_v31 = vsel %vm617_vm5, %v569_v16, %v649_v21 }
 0x124   : > { %vm620_vm8 = vcmp.gt.f32.partialorder %v575_v25, 0.0  ;;  %v652_v27 = vmul.f32 0.01, %v575_v25  ;;  %v682_v8 = vsel %vm618_vm6, %v571_v20, %v650_v24 }
 0x125   : > { %v683_v37 = vsel %vm619_vm7, %v573_v22, %v651_v26 }
 0x126   : > { %v578_v38 = vpop.f32.mrb[24].mxu0  ;;  %v684_v40 = vsel %vm620_vm8, %v575_v25, %v652_v27  ;;  %v703_v41 = vpack.c.bf16 %v683_v37, %v681_v31  ;;  %v3402_v21 = vpop.permute.xlu1 %1358  ;;  %v2799_v27 = vld [vmem:[%s4512_s7 + $0x70] sm:$0xff]  }
 0x127   : > { %v579_v43 = vadd.f32 %v578_v38, %v3324_v33  ;;  %v580_v44 = vpop.f32.mrb[25].mxu0  ;;  %v704_v45 = vpack.c.bf16 %v684_v40, %v682_v8  ;;  %v2800_v37 = vld [vmem:[%s4512_s7 + $0x30] sm:$0xff]   ;;  %2535 = vmatprep.subr.bf16.mxu0 %v2799_v27  ;;  %v3424_v38 = vpop.permute.xlu0 %1342  ;;  %v2801_v8 = vld [vmem:[%s4512_s7 + $0x78] sm:$0xff]   ;;  %v1042_v27 = vld [vmem:[%s4510_s5] ss:$8 sm:$0x3] }
 0x128   : > { %v581_v46 = vadd.f32 %v580_v44, %v3331_v36  ;;  %v582_v47 = vpop.f32.mrb[26].mxu0  ;;  %2536 = vmatpush3.bf16.msra.mxu0 %v2800_v37  ;;  %v2802_v40 = vld [vmem:[%s4512_s7 + $0x38] sm:$0xff]  }
 0x129   : > { %v653_v48 = vmul.f32 0.01, %v579_v43  ;;  %v583_v49 = vadd.f32 %v582_v47, %v3324_v33  ;;  %v584_v34 = vpop.f32.mrb[27].mxu0  ;;  %995 = vmatprep.mubr.bf16.mxu1 %v704_v45  ;;  %vm621_vm9 = vcmp.gt.f32.partialorder %v579_v43, 0.0  ;;  %2537 = vmatprep.subr.bf16.mxu0 %v2801_v8 }
 0x12a   : > { %v654_v29 = vmul.f32 0.01, %v581_v46  ;;  %v585_v51 = vadd.f32 %v584_v34, %v3331_v36  ;;  %996 = vmatmul.mubr.bf16.gmra.mrb[20].mxu1 %v703_v41  ;;  %vm622_vm10 = vcmp.gt.f32.partialorder %v581_v46, 0.0  ;;  %v3404_v22 = vpop.permute.xlu1 %1362 }
 0x12b   : > { %vm623_vm11 = vcmp.gt.f32.partialorder %v583_v49, 0.0  ;;  %v655_v53 = vmul.f32 0.01, %v583_v49  ;;  %v685_v55 = vsel %vm621_vm9, %v579_v43, %v653_v48  ;;  %v3434_v43 = vpop.permute.xlu0 %1354 }
 0x12c   : > { %vm624_vm12 = vcmp.gt.f32.partialorder %v585_v51, 0.0  ;;  %v656_v54 = vmul.f32 0.01, %v585_v51  ;;  %v686_v59 = vsel %vm622_vm10, %v581_v46, %v654_v29  ;;  %2538 = vmatpush3.bf16.msra.mxu0 %v2802_v40 }
 0x12d   : > { %v687_v57 = vsel %vm623_vm11, %v583_v49, %v655_v53 }
 0x12e   : > { %v588_v58 = vpop.f32.mrb[28].mxu0  ;;  %v688_v60 = vsel %vm624_vm12, %v585_v51, %v656_v54  ;;  %v705_v61 = vpack.c.bf16 %v687_v57, %v685_v55 }
 0x12f   : > { %v589_v35 = vadd.f32 %v588_v58, %v3324_v33  ;;  %v590_v63 = vpop.f32.mrb[29].mxu0  ;;  %v706_v0 = vpack.c.bf16 %v688_v60, %v686_v59  ;;  %v3438_v45 = vpop.permute.xlu0 %1487 }
 0x130   : > { %v591_v1 = vadd.f32 %v590_v63, %v3331_v36  ;;  %v592_v4 = vpop.f32.mrb[30].mxu0 }
 0x131   : > { %v657_v5 = vmul.f32 0.01, %v589_v35  ;;  %v593_v7 = vadd.f32 %v592_v4, %v3324_v33  ;;  %v594_v9 = vpop.f32.mrb[31].mxu0  ;;  %1005 = vmatprep.mubr.bf16.mxu1 %v706_v0  ;;  %vm625_vm13 = vcmp.gt.f32.partialorder %v589_v35, 0.0 }
 0x132   : > { %v658_v10 = vmul.f32 0.01, %v591_v1  ;;  %v595_v11 = vadd.f32 %v594_v9, %v3331_v36  ;;  %1006 = vmatmul.mubr.bf16.gmra.mrb[24].mxu1 %v705_v61  ;;  %vm626_vm14 = vcmp.gt.f32.partialorder %v591_v1, 0.0  ;;  %v3406_v36 = vpop.permute.xlu1 %1503  ;;  %v3491_v9 = vld [vmem:[%s4514_s9 + $0x8] sm:$0xff]  }
 0x133   : > { %vm627_vm15 = vcmp.gt.f32.partialorder %v593_v7, 0.0  ;;  %v659_v12 = vmul.f32 0.01, %v593_v7  ;;  %v689_v16 = vsel %vm625_vm13, %v589_v35, %v657_v5  ;;  %v3442_v47 = vpop.permute.xlu0 %1499  ;;  %v3483_v5 = vld [vmem:[%s4514_s9] sm:$0xff]   ;;  %4531 = vst [vmem:[#allocation6_spill] sm:$0xff] %v3491_v9 }
 0x134   : > { %vm628_vm0 = vcmp.gt.f32.partialorder %v595_v11, 0.0  ;;  %v660_v13 = vmul.f32 0.01, %v595_v11  ;;  %v690_v18 = vsel %vm626_vm14, %v591_v1, %v658_v10  ;;  %4530 = vst [vmem:[#allocation5_spill] sm:$0xff] %v3483_v5  ;;  %2603 = vmatprep.subr.bf16.mxu0 %v3483_v5  ;;  %2635 = vmatprep.subr.bf16.mxu1 %v3483_v5 }
 0x135   : > { %v691_v17 = vsel %vm627_vm15, %v593_v7, %v659_v12  ;;  %2643 = vmatpush3.bf16.msra.mxu1 %v3483_v5 }
 0x136   : > { %v692_v20 = vsel %vm628_vm0, %v595_v11, %v660_v13  ;;  %v707_v6 = vpack.c.bf16 %v691_v17, %v689_v16  ;;  %v3408_v23 = vpop.permute.xlu1 %1075  ;;  %2636 = vmatprep.subr.bf16.mxu1 %v3491_v9  ;;  %v3501_v11 = vld [vmem:[%s4514_s9 + $0x10] sm:$0xff]   ;;  %v2488_v16 = vld [vmem:[%s4510_s5 + $0x1] ss:$8 sm:$0x3]  ;;  %v3515_v17 = vld [vmem:[%s4514_s9 + $0x18] sm:$0xff]  }
 0x137   : > { %v708_v33 = vpack.c.bf16 %v692_v20, %v690_v18  ;;  %v3446_v49 = vpop.permute.xlu0 %1511  ;;  %4532 = vst [vmem:[#allocation7_spill] sm:$0xff] %v3501_v11  ;;  %4534 = vst [vmem:[#allocation9_spill] sm:$0xff] %v3515_v17  ;;  %v2489_v18 = vld [vmem:[%s4510_s5 + $0x2] ss:$8 sm:$0x3]  ;;  %v3522_v20 = vrot.slane %v2488_v16, %v3314_v30 }
 0x138   : > { %v3537_v8 = vrot.slane %v2489_v18, %v3314_v30  ;;  %v3540_v40 = vrot.slane %v2489_v18, %v3320_v32  ;;  %v3560_v18 = vrot.slane %v1042_v27, %v3314_v30 }
 0x139   : > { %1015 = vmatprep.mubr.bf16.mxu1 %v708_v33  ;;  %2644 = vmatpush3.bf16.msra.mxu1 %v3491_v9  ;;  %v2490_v33 = vld [vmem:[%s4510_s5 + $0x3] ss:$8 sm:$0x3]  ;;  %v3553_v5 = vmul.f32 %v3522_v20, %v3337_v42 }
 0x13a   : > { %1016 = vmatmul.mubr.bf16.gmra.mrb[28].mxu1 %v707_v6  ;;  %v3410_v24 = vpop.permute.xlu1 %1225  ;;  %2637 = vmatprep.subr.bf16.mxu1 %v3501_v11  ;;  %v3525_v6 = vrot.slane %v2488_v16, %v3320_v32  ;;  %v3548_v9 = vrot.slane %v2490_v33, %v3320_v32 }
 0x13b   : > { %v3450_v29 = vpop.permute.xlu0 %1209  ;;  %4536 = vst [vmem:[#allocation11_spill] sm:$0xff] %v3553_v5  ;;  %v3575_v5 = vmul.f32 %v3537_v8, %v3424_v38 }
 0x13d   : > { %2645 = vmatpush3.bf16.msra.mxu1 %v3501_v11  ;;  %v3545_v11 = vrot.slane %v2490_v33, %v3314_v30  ;;  %v3567_v33 = vmul.f32 %v3522_v20, %v3344_v56 }
 0x13e   : > { %v3412_v25 = vpop.permute.xlu1 %1229  ;;  %2638 = vmatprep.subr.bf16.mxu1 %v3515_v17 }
 0x13f   : > { %v3456_v54 = vpop.permute.xlu0 %1221  ;;  %4538 = vst [vmem:[#allocation13_spill] sm:$0xff] %v3567_v33  ;;  %v3589_v33 = vmul.f32 %v3540_v40, %v3351_v3 }
 0x141   : > { %2646 = vmatpush3.bf16.msra.mxu1 %v3515_v17  ;;  %v3571_v17 = vmul.f32 %v3525_v6, %v3344_v56  ;;  %4541 = vst [vmem:[#allocation16_spill] sm:$0xff] %v3589_v33  ;;  %v3593_v56 = vmul.f32 %v3537_v8, %v3434_v43  ;;  %v3613_v33 = vmul.f32 %v3548_v9, %v3438_v45 }
 0x142   : > { %v3414_v26 = vpop.permute.xlu1 %1370 }
 0x143   : > { %v3460_v57 = vpop.permute.xlu0 %1233  ;;  %4539 = vst [vmem:[#allocation14_spill] sm:$0xff] %v3571_v17  ;;  %4542 = vst [vmem:[#allocation17_spill] sm:$0xff] %v3593_v56  ;;  %v3597_v17 = vmul.f32 %v3540_v40, %v3434_v43  ;;  %v3618_v43 = vld [vmem:[%s4511_s6] sm:$0x3]  ;;  %v3630_v56 = vmul.f32 %v3560_v18, %v3372_v50 }
 0x144   : > { %4545 = vst [vmem:[#allocation20_spill] sm:$0xff] %v3613_v33 }
 0x145   : > { %4543 = vst [vmem:[#allocation18_spill] sm:$0xff] %v3597_v17  ;;  %v3622_v17 = vmul.f32 %v3560_v18, %v3363_v39  ;;  %4547 = vst [vmem:[#allocation22_spill] sm:$0xff] %v3630_v56  ;;  %v3652_v56 = vmul.f32 %v3540_v40, %v3380_v15 }
 0x146   : > { %v3419_v31 = vpop.permute.xlu1 %1507 }
 0x147   : > { %v3464_v59 = vpop.permute.xlu0 %1245  ;;  %4546 = vst [vmem:[#allocation21_spill] sm:$0xff] %v3622_v17  ;;  %v3644_v17 = vmul.f32 %v3525_v6, %v3376_v62 }
 0x149   : > { %4550 = vst [vmem:[#allocation25_spill] sm:$0xff] %v3644_v17  ;;  %v3668_v17 = vrot.slane %v3618_v43, %v3314_v30  ;;  %v3690_v30 = vmul.f32 %v3525_v6, %v3400_v14 }
 0x14a   : > { %v3432_v41 = vpop.permute.xlu1 %1085 }
 0x14b   : > { %v3468_v61 = vpop.permute.xlu0 %1045  ;;  %4555 = vst [vmem:[#allocation30_spill] sm:$0xff] %v3690_v30  ;;  %v3714_v30 = vmul.f32 %v3540_v40, %v3404_v22 }
 0x14d   : > { %4558 = vst [vmem:[#allocation33_spill] sm:$0xff] %v3714_v30 }
 0x14e   : > { %v3436_v44 = vpop.permute.xlu1 %1090 }
 0x14f   : > { %v3472_v63 = vpop.permute.xlu0 %1050 }
 0x152   : > { %v3440_v46 = vpop.permute.xlu1 %1237 }
 0x153   : > { %v3476_v1 = vpop.permute.xlu0 %1065 }
 0x156   : > { %v3444_v48 = vpop.permute.xlu1 %1374 }
 0x157   : > { %v3485_v7 = vpop.permute.xlu0 %1080 }
 0x15a   : > { %v3448_v34 = vpop.permute.xlu1 %1515 }
 0x15b   : > { %v3503_v12 = vpop.permute.xlu0 %1095 }
 0x15e   : > { %v3452_v51 = vpop.permute.xlu1 %1519 }
 0x15f   : > { %v3534_v37 = vpop.permute.xlu0 %1110 }
 0x162   : > { %v3454_v53 = vpop.permute.xlu1 %1100 }
 0x166   : > { %v3458_v55 = vpop.permute.xlu1 %1241 }
 0x16a   : > { %v3462_v58 = vpop.permute.xlu1 %1382 }
 0x16e   : > { %v3466_v60 = vpop.permute.xlu1 %1386 }
 0x172   : > { %v3470_v35 = vpop.permute.xlu1 %1527 }
 0x176   : > { %v3474_v0 = vpop.permute.xlu1 %1105 }
 0x17a   : > { %v3478_v4 = vpop.permute.xlu1 %1249 }
 0x17e   : > { %v3495_v10 = vpop.permute.xlu1 %1253 }
 0x182   : > { %v3506_v13 = vpop.permute.xlu1 %1394 }
 0x183   : > { %4533 = vst [vmem:[#allocation8_spill] sm:$0xff] %v3506_v13  ;;  %v3557_v13 = vmul.f32 %v3525_v6, %v3337_v42  ;;  %v3579_v42 = vmul.f32 %v3540_v40, %v3424_v38  ;;  %v3601_v38 = vmul.f32 %v3545_v11, %v3357_v19 }
 0x185   : > { %4537 = vst [vmem:[#allocation12_spill] sm:$0xff] %v3557_v13  ;;  %4540 = vst [vmem:[#allocation15_spill] sm:$0xff] %v3579_v42  ;;  %v3581_v13 = vpop.permute.xlu0 %1366  ;;  %v3605_v42 = vmul.f32 %v3548_v9, %v3357_v19 }
 0x186   : > { %v3542_v16 = vpop.permute.xlu1 %1531 }
 0x187   : > { %4535 = vst [vmem:[#allocation10_spill] sm:$0xff] %v3542_v16  ;;  %v3563_v16 = vrot.slane %v1042_v27, %v3320_v32  ;;  %v3585_v27 = vmul.f32 %v3537_v8, %v3351_v3  ;;  %v3609_v3 = vmul.f32 %v3545_v11, %v3438_v45 }
 0x189   : > { %4544 = vst [vmem:[#allocation19_spill] sm:$0xff] %v3609_v3  ;;  %v3626_v19 = vmul.f32 %v3563_v16, %v3363_v39  ;;  %v3634_v45 = vmul.f32 %v3563_v16, %v3372_v50  ;;  %v3640_v3 = vmul.f32 %v3522_v20, %v3376_v62  ;;  %v3648_v39 = vmul.f32 %v3537_v8, %v3380_v15 }
 0x18a   : > { %v3636_v33 = vpop.permute.xlu1 %1115  ;;  %v3656_v50 = vmul.f32 %v3545_v11, %v3386_v28  ;;  %v3664_v62 = vmul.f32 %v3545_v11, %v3392_v52  ;;  %v3672_v15 = vmul.f32 %v3548_v9, %v3392_v52  ;;  %v3694_v52 = vmul.f32 %v3537_v8, %v3402_v21 }
 0x18b   : > { %4548 = vst [vmem:[#allocation23_spill] sm:$0xff] %v3634_v45  ;;  %4549 = vst [vmem:[#allocation24_spill] sm:$0xff] %v3640_v3  ;;  %v3660_v45 = vmul.f32 %v3548_v9, %v3386_v28  ;;  %v3676_v3 = vmul.f32 %v3560_v18, %v3394_v2  ;;  %v3680_v28 = vmul.f32 %v3563_v16, %v3394_v2 }
 0x18c   : > { %4552 = vst [vmem:[#allocation27_spill] sm:$0xff] %v3664_v62  ;;  %v3686_v62 = vpop.permute.xlu0 %1378  ;;  %4556 = vst [vmem:[#allocation31_spill] sm:$0xff] %v3694_v52  ;;  %v3702_v2 = vmul.f32 %v3548_v9, %v3442_v47  ;;  %v3718_v52 = vmul.f32 %v3545_v11, %v3406_v36 }
 0x18d   : > { %4551 = vst [vmem:[#allocation26_spill] sm:$0xff] %v3660_v45  ;;  %4553 = vst [vmem:[#allocation28_spill] sm:$0xff] %v3676_v3  ;;  %v3684_v45 = vmul.f32 %v3522_v20, %v3400_v14  ;;  %v3698_v3 = vmul.f32 %v3545_v11, %v3442_v47  ;;  %v3710_v14 = vmul.f32 %v3537_v8, %v3404_v22 }
 0x18e   : > { %4554 = vst [vmem:[#allocation29_spill] sm:$0xff] %v3680_v28  ;;  %4557 = vst [vmem:[#allocation32_spill] sm:$0xff] %v3702_v2  ;;  %v3706_v28 = vmul.f32 %v3540_v40, %v3402_v21  ;;  %v3722_v47 = vmul.f32 %v3548_v9, %v3406_v36  ;;  %v3726_v21 = vmul.f32 %v3560_v18, %v3408_v23  ;;  %v3736_v30 = vpop.permute.xlu1 %1120 }
 0x18f   : > { %4559 = vst [vmem:[#allocation34_spill] sm:$0xff] %v3718_v52  ;;  %v3730_v2 = vmul.f32 %v3563_v16, %v3408_v23  ;;  %v3734_v22 = vmul.f32 %v3522_v20, %v3410_v24  ;;  %v3740_v52 = vmul.f32 %v3525_v6, %v3410_v24  ;;  %v3744_v36 = vmul.f32 %v3522_v20, %v3412_v25 }
 0x190   : > { %4560 = vst [vmem:[#allocation35_spill] sm:$0xff] %v3722_v47  ;;  %v3748_v47 = vmul.f32 %v3525_v6, %v3412_v25  ;;  %v3752_v23 = vmul.f32 %v3545_v11, %v3446_v49  ;;  %v3760_v24 = vmul.f32 %v3540_v40, %v3414_v26  ;;  %v3768_v25 = vmul.f32 %v3522_v20, %v3450_v29 }
 0x191   : > { %4561 = vst [vmem:[#allocation36_spill] sm:$0xff] %v3734_v22  ;;  %4562 = vst [vmem:[#allocation37_spill] sm:$0xff] %v3740_v52  ;;  %v3756_v22 = vmul.f32 %v3537_v8, %v3414_v26  ;;  %v3764_v52 = vmul.f32 %v3548_v9, %v3446_v49  ;;  %v3780_v26 = vmul.f32 %v3525_v6, %v3450_v29 }
 0x192   : > { %4563 = vst [vmem:[#allocation38_spill] sm:$0xff] %v3748_v47  ;;  %4564 = vst [vmem:[#allocation39_spill] sm:$0xff] %v3752_v23  ;;  %v3772_v47 = vmul.f32 %v3545_v11, %v3419_v31  ;;  %v3776_v23 = vmul.f32 %v3548_v9, %v3419_v31  ;;  %v3784_v49 = vmul.f32 %v3522_v20, %v3456_v54 }
 0x193   : > { %4565 = vst [vmem:[#allocation40_spill] sm:$0xff] %v3756_v22  ;;  %4566 = vst [vmem:[#allocation41_spill] sm:$0xff] %v3760_v24  ;;  %v3788_v24 = vmul.f32 %v3560_v18, %v3432_v41  ;;  %v3792_v22 = vmul.f32 %v3563_v16, %v3432_v41  ;;  %v3796_v31 = vmul.f32 %v3525_v6, %v3456_v54 }
 0x194   : > { %4567 = vst [vmem:[#allocation42_spill] sm:$0xff] %v3764_v52  ;;  %4568 = vst [vmem:[#allocation43_spill] sm:$0xff] %v3772_v47  ;;  %v1391_v52 = vpop.permute.xlu0 %1390  ;;  %v3800_v29 = vmul.f32 %v3522_v20, %v3460_v57  ;;  %v3806_v47 = vmul.f32 %v3560_v18, %v3436_v44  ;;  %v3814_v41 = vmul.f32 %v3525_v6, %v3460_v57 }
 0x195   : > { %4569 = vst [vmem:[#allocation44_spill] sm:$0xff] %v3776_v23  ;;  %4570 = vst [vmem:[#allocation45_spill] sm:$0xff] %v3788_v24  ;;  %v3802_v23 = vpop.permute.xlu1 %1261  ;;  %v3810_v24 = vmul.f32 %v3563_v16, %v3436_v44  ;;  %v3818_v54 = vmul.f32 %v3522_v20, %v3440_v46  ;;  %v3830_v44 = vmul.f32 %v3525_v6, %v3464_v59 }
 0x196   : > { %4571 = vst [vmem:[#allocation46_spill] sm:$0xff] %v3792_v22  ;;  %4572 = vst [vmem:[#allocation47_spill] sm:$0xff] %v3800_v29  ;;  %v3822_v29 = vmul.f32 %v3525_v6, %v3440_v46  ;;  %v3826_v22 = vmul.f32 %v3522_v20, %v3464_v59  ;;  %v3834_v57 = vmul.f32 %v3537_v8, %v3444_v48 }
 0x197   : > { %4573 = vst [vmem:[#allocation48_spill] sm:$0xff] %v3810_v24  ;;  %4574 = vst [vmem:[#allocation49_spill] sm:$0xff] %v3818_v54  ;;  %v3838_v24 = vmul.f32 %v3540_v40, %v3444_v48  ;;  %v1134_v46 = vmul.f32 %v3560_v18, %v3468_v61  ;;  %v3856_v48 = vmul.f32 %v3560_v18, %v3472_v63 }
 0x198   : > { %4575 = vst [vmem:[#allocation50_spill] sm:$0xff] %v3822_v29  ;;  %4576 = vst [vmem:[#allocation51_spill] sm:$0xff] %v3826_v22  ;;  %v3844_v29 = vmul.f32 %v3563_v16, %v3468_v61  ;;  %v3848_v22 = vmul.f32 %v3545_v11, %v3448_v34  ;;  %v1524_v59 = vpop.permute.xlu0 %1523  ;;  %v3864_v61 = vmul.f32 %v3545_v11, %v3452_v51 }
 0x199   : > { %4577 = vst [vmem:[#allocation52_spill] sm:$0xff] %v3830_v44  ;;  %4578 = vst [vmem:[#allocation53_spill] sm:$0xff] %v3834_v57  ;;  %v3852_v44 = vmul.f32 %v3548_v9, %v3448_v34  ;;  %v3872_v34 = vmul.f32 %v3560_v18, %v3476_v1  ;;  %v3884_v54 = vmul.f32 %v3563_v16, %v3485_v7 }
 0x19a   : > { %4579 = vst [vmem:[#allocation54_spill] sm:$0xff] %v3838_v24  ;;  %4580 = vst [vmem:[#allocation55_spill] sm:$0xff] %v3848_v22  ;;  %v3860_v24 = vmul.f32 %v3563_v16, %v3472_v63  ;;  %v3868_v22 = vmul.f32 %v3548_v9, %v3452_v51  ;;  %v3880_v63 = vmul.f32 %v3560_v18, %v3485_v7 }
 0x19b   : > { %4581 = vst [vmem:[#allocation56_spill] sm:$0xff] %v3852_v44  ;;  %4582 = vst [vmem:[#allocation57_spill] sm:$0xff] %v3864_v61  ;;  %v3876_v44 = vmul.f32 %v3563_v16, %v3476_v1  ;;  %v3888_v51 = vmul.f32 %v3560_v18, %v3454_v53  ;;  %v3896_v1 = vmul.f32 %v3560_v18, %v3503_v12  ;;  %v1399_v61 = vpop.permute.xlu1 %1398 }
 0x19c   : > { %4583 = vst [vmem:[#allocation58_spill] sm:$0xff] %v3868_v22  ;;  %v3892_v22 = vmul.f32 %v3563_v16, %v3454_v53  ;;  %v3900_v57 = vmul.f32 %v3563_v16, %v3503_v12  ;;  %v3904_v7 = vmul.f32 %v3522_v20, %v3458_v55  ;;  %v3912_v53 = vmul.f32 %v3560_v18, %v3534_v37 }
 0x19d   : > { %4584 = vst [vmem:[#allocation59_spill] sm:$0xff] %v3888_v51  ;;  %v3908_v51 = vmul.f32 %v3525_v6, %v3458_v55  ;;  %v3920_v12 = vmul.f32 %v3537_v8, %v3462_v58  ;;  %v3928_v55 = vrot.slane %v3618_v43, %v3320_v32  ;;  %v3948_v32 = vmul.f32 %v3560_v18, %v3474_v0 }
 0x19e   : > { %4585 = vst [vmem:[#allocation60_spill] sm:$0xff] %v3892_v22  ;;  %4586 = vst [vmem:[#allocation61_spill] sm:$0xff] %v3900_v57  ;;  %v3916_v22 = vmul.f32 %v3563_v16, %v3534_v37  ;;  %v3924_v57 = vmul.f32 %v3540_v40, %v3462_v58  ;;  %v3936_v37 = vmul.f32 %v3540_v40, %v3466_v60 }
 0x19f   : > { %4587 = vst [vmem:[#allocation62_spill] sm:$0xff] %v3908_v51  ;;  %4588 = vst [vmem:[#allocation63_spill] sm:$0xff] %v3912_v53  ;;  %v3932_v51 = vmul.f32 %v3537_v8, %v3466_v60  ;;  %v3944_v58 = vmul.f32 %v3548_v9, %v3470_v35  ;;  %v1536_v53 = vpop.permute.xlu0 %1535  ;;  %v3952_v43 = vmul.f32 %v3563_v16, %v3474_v0 }
 0x1a0   : > { %4589 = vst [vmem:[#allocation64_spill] sm:$0xff] %v3916_v22  ;;  %4590 = vst [vmem:[#allocation65_spill] sm:$0xff] %v3920_v12  ;;  %v3940_v22 = vmul.f32 %v3545_v11, %v3470_v35  ;;  %v3956_v60 = vmul.f32 %v3522_v20, %v3478_v4  ;;  %v3964_v35 = vmul.f32 %v3537_v8, %v3581_v13 }
 0x1a1   : > { %4591 = vst [vmem:[#allocation66_spill] sm:$0xff] %v3924_v57  ;;  %4592 = vst [vmem:[#allocation67_spill] sm:$0xff] %v3932_v51  ;;  %v3972_v0 = vmul.f32 %v3522_v20, %v3495_v10  ;;  %v4607_v51 = vld [vmem:[#allocation10_spill] sm:$0xff]  ;;  %v4011_v12 = vmul.f32 %v3560_v18, %v3636_v33 }
 0x1a2   : > { %4593 = vst [vmem:[#allocation68_spill] sm:$0xff] %v3936_v37  ;;  %4594 = vst [vmem:[#allocation69_spill] sm:$0xff] %v3940_v22  ;;  %v3960_v22 = vmul.f32 %v3525_v6, %v3478_v4  ;;  %v3980_v4 = vmul.f32 %v3537_v8, %v3686_v62  ;;  %v4006_v57 = vmul.f32 %v3548_v9, %v4607_v51 }
 0x1a3   : > { %4595 = vst [vmem:[#allocation70_spill] sm:$0xff] %v3944_v58  ;;  %4596 = vst [vmem:[#allocation71_spill] sm:$0xff] %v3948_v32  ;;  %v3968_v58 = vmul.f32 %v3540_v40, %v3581_v13 }
 0x1a4   : > { %4597 = vst [vmem:[#allocation72_spill] sm:$0xff] %v3952_v43  ;;  %4598 = vst [vmem:[#allocation73_spill] sm:$0xff] %v3956_v60  ;;  %v3976_v43 = vmul.f32 %v3525_v6, %v3495_v10  ;;  %v4602_v60 = vld [vmem:[#allocation8_spill] sm:$0xff]  ;;  %v3995_v10 = vmul.f32 %v3537_v8, %v1391_v52 }
 0x1a5   : > { %4599 = vst [vmem:[#allocation74_spill] sm:$0xff] %v3960_v22  ;;  %4600 = vst [vmem:[#allocation75_spill] sm:$0xff] %v3972_v0  ;;  %v3984_v22 = vmul.f32 %v3540_v40, %v3686_v62  ;;  %v3988_v13 = vmul.f32 %v3537_v8, %v4602_v60  ;;  %v3992_v32 = vmul.f32 %v3540_v40, %v4602_v60  ;;  %v1540_v0 = vpop.permute.xlu1 %1539 }
 0x1a6   : > { %4601 = vst [vmem:[#allocation76_spill] sm:$0xff] %v3976_v43  ;;  %4605 = vst [vmem:[#allocation78_spill] sm:$0xff] %v3995_v10  ;;  %v3998_v43 = vmul.f32 %v3540_v40, %v1391_v52  ;;  %v4002_v62 = vmul.f32 %v3545_v11, %v4607_v51  ;;  %v4015_v52 = vmul.f32 %v3563_v16, %v3636_v33 }
 0x1a7   : > { %4603 = vst [vmem:[#allocation8_spill] sm:$0xff] %v3988_v13  ;;  %4604 = vst [vmem:[#allocation77_spill] sm:$0xff] %v3992_v32  ;;  %v1258_v13 = vpop.permute.xlu0 %1257 }
 0x1a8   : > { %4606 = vst [vmem:[#allocation79_spill] sm:$0xff] %v3998_v43  ;;  %4608 = vst [vmem:[#allocation10_spill] sm:$0xff] %v4002_v62  ;;  %v4019_v43 = vmul.f32 %v3560_v18, %v3736_v30  ;;  %v4034_v18 = vmul.f32 %v3545_v11, %v1536_v53 }
 0x1a9   : > { %4609 = vst [vmem:[#allocation80_spill] sm:$0xff] %v4006_v57  ;;  %4610 = vst [vmem:[#allocation81_spill] sm:$0xff] %v4011_v12  ;;  %v4024_v57 = vmul.f32 %v3563_v16, %v3736_v30  ;;  %v4030_v12 = vmul.f32 %v3548_v9, %v1524_v59  ;;  %v4043_v30 = vmul.f32 %v3522_v20, %v3802_v23 }
 0x1aa   : > { %4611 = vst [vmem:[#allocation82_spill] sm:$0xff] %v4015_v52  ;;  %4612 = vst [vmem:[#allocation83_spill] sm:$0xff] %v4019_v43 }
 0x1ab   : > { %4613 = vst [vmem:[#allocation84_spill] sm:$0xff] %v4024_v57  ;;  %4615 = vst [vmem:[#allocation86_spill] sm:$0xff] %v4043_v30  ;;  %v4052_v57 = vmul.f32 %v3537_v8, %v1399_v61  ;;  %v4060_v30 = vmul.f32 %v3522_v20, %v1258_v13 }
 0x1d5   : > { %v947_v37 = vpop.f32.mrb[0].mxu1 }
 0x1d6   : > { %v948_v60 = vadd.f32 %v947_v37, %v3668_v17  ;;  %v949_v32 = vpop.f32.mrb[1].mxu1  ;;  %v4027_v37 = vmul.f32 %v3545_v11, %v1524_v59  ;;  %v4617_v59 = vld [vmem:[#allocation11_spill] sm:$0xff] }
 0x1d7   : > { %v950_v62 = vadd.f32 %v949_v32, %v3928_v55  ;;  %v951_v51 = vpop.f32.mrb[2].mxu1  ;;  %v4037_v32 = vmul.f32 %v3548_v9, %v1536_v53  ;;  %v4055_v53 = vmul.f32 %v3540_v40, %v1399_v61  ;;  %v4071_v61 = vmul.f32 %v3548_v9, %v1540_v0 }
 0x1d8   : > { %v1166_v10 = vadd.f32 %v1134_v46, %v948_v60  ;;  %v952_v33 = vadd.f32 %v951_v51, %v3668_v17  ;;  %v953_v52 = vpop.f32.mrb[3].mxu1  ;;  %v4047_v46 = vmul.f32 %v3525_v6, %v3802_v23  ;;  %v4063_v23 = vmul.f32 %v3525_v6, %v1258_v13 }
 0x1d9   : > { %4614 = vst [vmem:[#allocation85_spill] sm:$0xff] %v4037_v32  ;;  %v1167_v43 = vadd.f32 %v3844_v29, %v950_v62  ;;  %v954_v16 = vadd.f32 %v953_v52, %v3928_v55  ;;  %4618 = vst [vmem:[#allocation11_spill] sm:$0xff] %v4055_v53  ;;  %v1544_v29 = vpop.permute.xlu1 %1543  ;;  %v4619_v62 = vld [vmem:[#allocation12_spill] sm:$0xff] }
 0x1da   : > { %4616 = vst [vmem:[#allocation87_spill] sm:$0xff] %v4047_v46  ;;  %v1307_v60 = vadd.f32 %v4617_v59, %v1166_v10  ;;  %v1168_v51 = vadd.f32 %v3856_v48, %v952_v33  ;;  %v1403_v10 = vpop.permute.xlu0 %1402  ;;  %v4620_v33 = vld [vmem:[#allocation13_spill] sm:$0xff]  ;;  %v4068_v46 = vmul.f32 %v3545_v11, %v1540_v0  ;;  %v4076_v53 = vmul.f32 %v3545_v11, %v1544_v29 }
 0x1db   : > { %v1308_v52 = vadd.f32 %v4619_v62, %v1167_v43  ;;  %v1169_v32 = vadd.f32 %v3860_v24, %v954_v16  ;;  %v4621_v43 = vld [vmem:[#allocation15_spill] sm:$0xff]  ;;  %v4622_v24 = vld [vmem:[#allocation14_spill] sm:$0xff]  ;;  %v4079_v6 = vmul.f32 %v3548_v9, %v1544_v29  ;;  %v4085_v0 = vmul.f32 %v3537_v8, %v1403_v10 }
 0x1dc   : > { %v1448_v48 = vadd.f32 %v3575_v5, %v1307_v60  ;;  %v1309_v59 = vadd.f32 %v4620_v33, %v1168_v51  ;;  %v4091_v9 = vmul.f32 %v3540_v40, %v1403_v10  ;;  %v4625_v29 = vld [vmem:[#allocation19_spill] sm:$0xff] }
 0x1dd   : > { %v1449_v62 = vadd.f32 %v4621_v43, %v1308_v52  ;;  %v1310_v16 = vadd.f32 %v4622_v24, %v1169_v32  ;;  %v957_v20 = vpop.f32.mrb[4].mxu1  ;;  %4623 = vst [vmem:[#allocation12_spill] sm:$0xff] %v4079_v6  ;;  %v4624_v32 = vld [vmem:[#allocation16_spill] sm:$0xff] }
 0x1de   : > { %v1589_v5 = vadd.f32 %v3601_v38, %v1448_v48  ;;  %v1450_v13 = vadd.f32 %v3585_v27, %v1309_v59  ;;  %v958_v60 = vadd.f32 %v957_v20, %v3668_v17  ;;  %v959_v51 = vpop.f32.mrb[5].mxu1  ;;  %v4626_v48 = vld [vmem:[#allocation21_spill] sm:$0xff]  ;;  %v4627_v20 = vld [vmem:[#allocation20_spill] sm:$0xff] }
 0x1df   : > { %v1590_v52 = vadd.f32 %v3605_v42, %v1449_v62  ;;  %v1451_v33 = vadd.f32 %v4624_v32, %v1310_v16  ;;  %v960_v11 = vadd.f32 %v959_v51, %v3928_v55  ;;  %v961_v43 = vpop.f32.mrb[6].mxu1  ;;  %v4628_v51 = vld [vmem:[#allocation22_spill] sm:$0xff]  ;;  %v4629_v32 = vld [vmem:[#allocation23_spill] sm:$0xff] }
 0x1e0   : > { %vm1621_vm1 = vcmp.gt.f32.partialorder %v1589_v5, 0.0  ;;  %v1653_v38 = vmul.f32 0.01, %v1589_v5  ;;  %v1591_v27 = vadd.f32 %v4625_v29, %v1450_v13  ;;  %v1170_v59 = vadd.f32 %v4626_v48, %v958_v60  ;;  %v963_v24 = vpop.f32.mrb[7].mxu1  ;;  %v4630_v48 = vld [vmem:[#allocation24_spill] sm:$0xff] }
 0x1e1   : > { %v1592_v8 = vadd.f32 %v4627_v20, %v1451_v33  ;;  %v1171_v6 = vadd.f32 %v3626_v19, %v960_v11  ;;  %v962_v42 = vadd.f32 %v961_v43, %v3668_v17  ;;  %v964_v62 = vadd.f32 %v963_v24, %v3928_v55  ;;  %v4631_v20 = vld [vmem:[#allocation25_spill] sm:$0xff] }
 0x1e2   : > { %vm1623_vm2 = vcmp.gt.f32.partialorder %v1591_v27, 0.0  ;;  %v1655_v16 = vmul.f32 0.01, %v1591_v27  ;;  %v1311_v40 = vadd.f32 %v3768_v25, %v1170_v59  ;;  %vm1622_vm3 = vcmp.gt.f32.partialorder %v1590_v52, 0.0 }
 0x1e3   : > { %v1312_v10 = vadd.f32 %v3780_v26, %v1171_v6  ;;  %v1172_v13 = vadd.f32 %v4628_v51, %v962_v42  ;;  %v1173_v60 = vadd.f32 %v4629_v32, %v964_v62  ;;  %vm1624_vm4 = vcmp.gt.f32.partialorder %v1592_v8, 0.0  ;;  %v4632_v51 = vld [vmem:[#allocation26_spill] sm:$0xff] }
 0x1e4   : > { %v1452_v33 = vadd.f32 %v3648_v39, %v1311_v40  ;;  %v1654_v29 = vmul.f32 0.01, %v1590_v52  ;;  %v1656_v19 = vmul.f32 0.01, %v1592_v8  ;;  %v1685_v11 = vsel %vm1621_vm1, %v1589_v5, %v1653_v38  ;;  %v4633_v5 = vld [vmem:[#allocation17_spill] sm:$0xff] }
 0x1e5   : > { %v1453_v43 = vadd.f32 %v3652_v56, %v1312_v10  ;;  %v1313_v24 = vadd.f32 %v4630_v48, %v1172_v13  ;;  %v1314_v25 = vadd.f32 %v4631_v20, %v1173_v60  ;;  %v967_v59 = vpop.f32.mrb[8].mxu1  ;;  %v1687_v26 = vsel %vm1623_vm2, %v1591_v27, %v1655_v16  ;;  %v4634_v56 = vld [vmem:[#allocation18_spill] sm:$0xff]  ;;  %v4635_v20 = vld [vmem:[#allocation27_spill] sm:$0xff] }
 0x1e6   : > { %v1593_v6 = vadd.f32 %v3656_v50, %v1452_v33  ;;  %v968_v42 = vadd.f32 %v967_v59, %v3668_v17  ;;  %v969_v62 = vpop.f32.mrb[9].mxu1  ;;  %v1686_v39 = vsel %vm1622_vm3, %v1590_v52, %v1654_v29  ;;  %v1688_v40 = vsel %vm1624_vm4, %v1592_v8, %v1656_v19 }
 0x1e7   : > { %v1594_v32 = vadd.f32 %v4632_v51, %v1453_v43  ;;  %v1454_v38 = vadd.f32 %v4633_v5, %v1313_v24  ;;  %v1455_v10 = vadd.f32 %v4634_v56, %v1314_v25  ;;  %v970_v13 = vadd.f32 %v969_v62, %v3928_v55  ;;  %v971_v60 = vpop.f32.mrb[10].mxu1  ;;  %v4636_v43 = vld [vmem:[#allocation28_spill] sm:$0xff]  ;;  %v4637_v25 = vld [vmem:[#allocation30_spill] sm:$0xff]  ;;  %v4638_v62 = vld [vmem:[#allocation29_spill] sm:$0xff] }
 0x1e8   : > { %v1174_v48 = vadd.f32 %v3872_v34, %v968_v42  ;;  %v972_v27 = vadd.f32 %v971_v60, %v3668_v17  ;;  %v973_v50 = vpop.f32.mrb[11].mxu1  ;;  %v1718_v16 = vpack.c.bf16 %v1688_v40, %v1686_v39  ;;  %v1717_v33 = vpack.c.bf16 %v1687_v26, %v1685_v11  ;;  %v4639_v26 = vld [vmem:[#allocation31_spill] sm:$0xff]  ;;  %v4640_v51 = vld [vmem:[#allocation5_spill] sm:$0xff] }
 0x1e9   : > { %v1595_v59 = vadd.f32 %v4635_v20, %v1454_v38  ;;  %v1596_v52 = vadd.f32 %v3672_v15, %v1455_v10  ;;  %v1175_v8 = vadd.f32 %v3876_v44, %v970_v13  ;;  %v974_v29 = vadd.f32 %v973_v50, %v3928_v55  ;;  %v4641_v10 = vld [vmem:[#allocation6_spill] sm:$0xff] }
 0x1ea   : > { %v1315_v19 = vadd.f32 %v3684_v45, %v1174_v48  ;;  %v1176_v24 = vadd.f32 %v4636_v43, %v972_v27  ;;  %1900 = vmatprep.mubr.bf16.mxu0 %v1718_v16  ;;  %vm1626_vm5 = vcmp.gt.f32.partialorder %v1594_v32, 0.0  ;;  %v1658_v34 = vmul.f32 0.01, %v1594_v32  ;;  %v4642_v27 = vld [vmem:[#allocation32_spill] sm:$0xff]  ;;  %v4643_v16 = vld [vmem:[#allocation33_spill] sm:$0xff]  ;;  %v4645_v43 = vld [vmem:[#allocation35_spill] sm:$0xff] }
 0x1eb   : > { %v1316_v42 = vadd.f32 %v4637_v25, %v1175_v8  ;;  %v1177_v39 = vadd.f32 %v4638_v62, %v974_v29  ;;  %1901 = vmatmul.mubr.bf16.vlgmr.msra.gmra.mrb[32].mxu0 %v1717_v33  ;;  %vm1628_vm6 = vcmp.gt.f32.partialorder %v1596_v52, 0.0  ;;  %v1660_v11 = vmul.f32 0.01, %v1596_v52  ;;  %v4646_v62 = vld [vmem:[#allocation7_spill] sm:$0xff] }
 0x1ec   : > { %v1456_v15 = vadd.f32 %v4639_v26, %v1315_v19  ;;  %v1317_v44 = vadd.f32 %v3784_v49, %v1176_v24  ;;  %v1690_v40 = vsel %vm1626_vm5, %v1594_v32, %v1658_v34  ;;  %vm1625_vm7 = vcmp.gt.f32.partialorder %v1593_v6, 0.0  ;;  %2604 = vmatpush3.bf16.msra.mxu0 %v4640_v51 }
 0x1ed   : > { %v1457_v45 = vadd.f32 %v3706_v28, %v1316_v42  ;;  %v1318_v5 = vadd.f32 %v3796_v31, %v1177_v39  ;;  %v977_v38 = vpop.f32.mrb[12].mxu1  ;;  %v1692_v56 = vsel %vm1628_vm6, %v1596_v52, %v1660_v11  ;;  %vm1627_vm8 = vcmp.gt.f32.partialorder %v1595_v59, 0.0  ;;  %2605 = vmatprep.subr.bf16.mxu0 %v4641_v10  ;;  %v4644_v52 = vld [vmem:[#allocation34_spill] sm:$0xff]  ;;  %v4647_v39 = vld [vmem:[#allocation36_spill] sm:$0xff] }
 0x1ee   : > { %v4133_v13 = vadd.f32 %v3698_v3, %v1456_v15  ;;  %v1458_v60 = vadd.f32 %v3710_v14, %v1317_v44  ;;  %v978_v49 = vadd.f32 %v977_v38, %v3668_v17  ;;  %v979_v32 = vpop.f32.mrb[13].mxu1  ;;  %v1720_v48 = vpack.c.bf16 %v1692_v56, %v1690_v40  ;;  %v4648_v15 = vld [vmem:[#allocation37_spill] sm:$0xff] }
 0x1ef   : > { %v1598_v50 = vadd.f32 %v4642_v27, %v1457_v45  ;;  %v1459_v28 = vadd.f32 %v4643_v16, %v1318_v5  ;;  %v980_v31 = vadd.f32 %v979_v32, %v3928_v55  ;;  %v981_v33 = vpop.f32.mrb[14].mxu1  ;;  %v1657_v20 = vmul.f32 0.01, %v1593_v6  ;;  %v4654_v16 = vld [vmem:[#allocation41_spill] sm:$0xff] }
 0x1f0   : > { %v4141_v8 = vadd.f32 %v4644_v52, %v1458_v60  ;;  %v1178_v3 = vadd.f32 %v3726_v21, %v978_v49  ;;  %v982_v29 = vadd.f32 %v981_v33, %v3668_v17  ;;  %v983_v14 = vpop.f32.mrb[15].mxu1  ;;  %1908 = vmatprep.mubr.bf16.mxu0 %v1720_v48  ;;  %v1659_v19 = vmul.f32 0.01, %v1595_v59  ;;  %2606 = vmatpush3.bf16.msra.mxu0 %v4641_v10  ;;  %v4651_v10 = vld [vmem:[#allocation43_spill] sm:$0xff]  ;;  %v4653_v48 = vld [vmem:[#allocation44_spill] sm:$0xff] }
 0x1f1   : > { %v1600_v24 = vadd.f32 %v4645_v43, %v1459_v28  ;;  %v1179_v34 = vadd.f32 %v3730_v2, %v980_v31  ;;  %v984_v25 = vadd.f32 %v983_v14, %v3928_v55  ;;  %v1689_v42 = vsel %vm1625_vm7, %v1593_v6, %v1657_v20  ;;  %2607 = vmatprep.subr.bf16.mxu0 %v4646_v62  ;;  %v4655_v52 = vld [vmem:[#allocation39_spill] sm:$0xff] }
 0x1f2   : > { %v1319_v11 = vadd.f32 %v4647_v39, %v1178_v3  ;;  %v1180_v21 = vadd.f32 %v3880_v63, %v982_v29  ;;  %v1691_v26 = vsel %vm1627_vm8, %v1595_v59, %v1659_v19  ;;  %vm1630_vm9 = vcmp.gt.f32.partialorder %v1598_v50, 0.0  ;;  %v4649_v63 = vld [vmem:[#allocation38_spill] sm:$0xff]  ;;  %v4656_v29 = vld [vmem:[#allocation45_spill] sm:$0xff] }
 0x1f3   : > { %v1320_v44 = vadd.f32 %v4648_v15, %v1179_v34  ;;  %v1181_v40 = vadd.f32 %v3884_v54, %v984_v25  ;;  %v1719_v51 = vpack.c.bf16 %v1691_v26, %v1689_v42  ;;  %vm1632_vm10 = vcmp.gt.f32.partialorder %v1600_v24, 0.0  ;;  %v4650_v54 = vld [vmem:[#allocation9_spill] sm:$0xff]  ;;  %v4658_v42 = vld [vmem:[#allocation46_spill] sm:$0xff] }
 0x1f4   : > { %v1460_v2 = vadd.f32 %v3964_v35, %v1319_v11  ;;  %v1321_v45 = vadd.f32 %v3744_v36, %v1180_v21  ;;  %v1662_v6 = vmul.f32 0.01, %v1598_v50  ;;  %v1664_v5 = vmul.f32 0.01, %v1600_v24  ;;  %2608 = vmatpush3.bf16.msra.mxu0 %v4646_v62  ;;  %v4652_v36 = vld [vmem:[#allocation40_spill] sm:$0xff] }
 0x1f5   : > { %v1461_v38 = vadd.f32 %v3968_v58, %v1320_v44  ;;  %v1322_v56 = vadd.f32 %v4649_v63, %v1181_v40  ;;  %1909 = vmatmul.mubr.bf16.gmra.mrb[36].mxu0 %v1719_v51  ;;  %v987_v59 = vpop.f32.mrb[16].mxu1  ;;  %vm1629_vm11 = vcmp.gt.f32.partialorder %v4133_v13, 0.0  ;;  %vm1631_vm12 = vcmp.gt.f32.partialorder %v4141_v8, 0.0  ;;  %2609 = vmatprep.subr.bf16.mxu0 %v4650_v54  ;;  %v4660_v40 = vld [vmem:[#allocation48_spill] sm:$0xff] }
 0x1f6   : > { %v4165_v35 = vadd.f32 %v4651_v10, %v1460_v2  ;;  %v1462_v60 = vadd.f32 %v4652_v36, %v1321_v45  ;;  %v988_v49 = vadd.f32 %v987_v59, %v3668_v17  ;;  %v989_v32 = vpop.f32.mrb[17].mxu1  ;;  %v1694_v58 = vsel %vm1630_vm9, %v1598_v50, %v1662_v6  ;;  %v4657_v50 = vld [vmem:[#allocation42_spill] sm:$0xff]  ;;  %v4661_v45 = vld [vmem:[#allocation53_spill] sm:$0xff] }
 0x1f7   : > { %v1602_v27 = vadd.f32 %v4653_v48, %v1461_v38  ;;  %v1463_v28 = vadd.f32 %v4654_v16, %v1322_v56  ;;  %v990_v31 = vadd.f32 %v989_v32, %v3928_v55  ;;  %v991_v33 = vpop.f32.mrb[18].mxu1  ;;  %v1696_v20 = vsel %vm1632_vm10, %v1600_v24, %v1664_v5  ;;  %v4659_v24 = vld [vmem:[#allocation47_spill] sm:$0xff]  ;;  %v4662_v5 = vld [vmem:[#allocation49_spill] sm:$0xff]  ;;  %v4663_v56 = vld [vmem:[#allocation54_spill] sm:$0xff] }
 0x1f8   : > { %v4175_v3 = vadd.f32 %v4655_v52, %v1462_v60  ;;  %v1182_v14 = vadd.f32 %v4656_v29, %v988_v49  ;;  %v992_v19 = vadd.f32 %v991_v33, %v3668_v17  ;;  %v993_v43 = vpop.f32.mrb[19].mxu1  ;;  %v1722_v34 = vpack.c.bf16 %v1696_v20, %v1694_v58  ;;  %2610 = vmatpush3.bf16.msra.mxu0 %v4650_v54  ;;  %v4664_v54 = vld [vmem:[#allocation50_spill] sm:$0xff]  ;;  %v4665_v49 = vld [vmem:[#allocation55_spill] sm:$0xff]  ;;  %v4667_v29 = vld [vmem:[#allocation57_spill] sm:$0xff] }
 0x1f9   : > { %v1604_v25 = vadd.f32 %v4657_v50, %v1463_v28  ;;  %v1183_v62 = vadd.f32 %v4658_v42, %v990_v31  ;;  %v994_v39 = vadd.f32 %v993_v43, %v3928_v55  ;;  %v1661_v11 = vmul.f32 0.01, %v4133_v13  ;;  %v4666_v28 = vld [vmem:[#allocation56_spill] sm:$0xff]  ;;  %v4669_v42 = vld [vmem:[#allocation61_spill] sm:$0xff] }
 0x1fa   : > { %v1323_v21 = vadd.f32 %v4659_v24, %v1182_v14  ;;  %v1184_v26 = vadd.f32 %v3806_v47, %v992_v19  ;;  %1916 = vmatprep.mubr.bf16.mxu0 %v1722_v34  ;;  %v1663_v15 = vmul.f32 0.01, %v4141_v8  ;;  %vm1634_vm13 = vcmp.gt.f32.partialorder %v1602_v27, 0.0  ;;  %v4671_v24 = vld [vmem:[#allocation62_spill] sm:$0xff] }
 0x1fb   : > { %v1324_v44 = vadd.f32 %v3814_v41, %v1183_v62  ;;  %v1185_v51 = vadd.f32 %v4660_v40, %v994_v39  ;;  %v1693_v2 = vsel %vm1629_vm11, %v4133_v13, %v1661_v11  ;;  %vm1636_vm14 = vcmp.gt.f32.partialorder %v1604_v25, 0.0  ;;  %v4673_v40 = vld [vmem:[#allocation51_spill] sm:$0xff] }
 0x1fc   : > { %v1464_v6 = vadd.f32 %v4661_v45, %v1323_v21  ;;  %v1325_v38 = vadd.f32 %v4662_v5, %v1184_v26  ;;  %v1695_v47 = vsel %vm1631_vm12, %v4141_v8, %v1663_v15  ;;  %v1666_v63 = vmul.f32 0.01, %v1602_v27  ;;  %v4672_v26 = vld [vmem:[#allocation60_spill] sm:$0xff]  ;;  %v4674_v45 = vld [vmem:[#allocation65_spill] sm:$0xff] }
 0x1fd   : > { %v1465_v59 = vadd.f32 %v4663_v56, %v1324_v44  ;;  %v1326_v41 = vadd.f32 %v4664_v54, %v1185_v51  ;;  %v1721_v10 = vpack.c.bf16 %v1695_v47, %v1693_v2  ;;  %v997_v36 = vpop.f32.mrb[20].mxu1  ;;  %v1668_v60 = vmul.f32 0.01, %v1604_v25  ;;  %v4676_v47 = vld [vmem:[#allocation66_spill] sm:$0xff]  ;;  %v4677_v54 = vld [vmem:[#allocation67_spill] sm:$0xff] }
 0x1fe   : > { %v4200_v32 = vadd.f32 %v4665_v49, %v1464_v6  ;;  %v1466_v13 = vadd.f32 %v3980_v4, %v1325_v38  ;;  %v998_v58 = vadd.f32 %v997_v36, %v3668_v17  ;;  %v999_v48 = vpop.f32.mrb[21].mxu1  ;;  %v1698_v16 = vsel %vm1634_vm13, %v1602_v27, %v1666_v63  ;;  %v4668_v27 = vld [vmem:[#allocation58_spill] sm:$0xff]  ;;  %v4675_v6 = vld [vmem:[#allocation52_spill] sm:$0xff] }
 0x1ff   : > { %v1606_v8 = vadd.f32 %v4666_v28, %v1465_v59  ;;  %v1467_v31 = vadd.f32 %v3984_v22, %v1326_v41  ;;  %1917 = vmatmul.mubr.bf16.gmra.mrb[40].mxu0 %v1721_v10  ;;  %v1000_v33 = vadd.f32 %v999_v48, %v3928_v55  ;;  %v1001_v20 = vpop.f32.mrb[22].mxu1  ;;  %v1700_v52 = vsel %vm1636_vm14, %v1604_v25, %v1668_v60  ;;  %v4670_v25 = vld [vmem:[#allocation59_spill] sm:$0xff]  ;;  %v4678_v49 = vld [vmem:[#allocation68_spill] sm:$0xff]  ;;  %v4679_v28 = vld [vmem:[#allocation69_spill] sm:$0xff] }
 0x200   : > { %v4210_v14 = vadd.f32 %v4667_v29, %v1466_v13  ;;  %v1186_v4 = vadd.f32 %v3896_v1, %v998_v58  ;;  %v1002_v19 = vadd.f32 %v1001_v20, %v3668_v17  ;;  %v1003_v43 = vpop.f32.mrb[23].mxu1  ;;  %v1724_v34 = vpack.c.bf16 %v1700_v52, %v1698_v16  ;;  %v4680_v20 = vld [vmem:[#allocation71_spill] sm:$0xff] }
 0x201   : > { %v1608_v50 = vadd.f32 %v4668_v27, %v1467_v31  ;;  %v1187_v62 = vadd.f32 %v4669_v42, %v1000_v33  ;;  %v1004_v22 = vadd.f32 %v1003_v43, %v3928_v55  ;;  %vm1633_vm15 = vcmp.gt.f32.partialorder %v4165_v35, 0.0  ;;  %v4683_v42 = vld [vmem:[#allocation73_spill] sm:$0xff] }
 0x202   : > { %v1327_v39 = vadd.f32 %v3904_v7, %v1186_v4  ;;  %v1188_v11 = vadd.f32 %v4670_v25, %v1002_v19  ;;  %1924 = vmatprep.mubr.bf16.mxu0 %v1724_v34  ;;  %vm1635_vm0 = vcmp.gt.f32.partialorder %v4175_v3, 0.0  ;;  %v1665_v1 = vmul.f32 0.01, %v4165_v35  ;;  %v4681_v4 = vld [vmem:[#allocation70_spill] sm:$0xff]  ;;  %v4682_v34 = vld [vmem:[#allocation72_spill] sm:$0xff] }
 0x203   : > { %v1328_v21 = vadd.f32 %v4671_v24, %v1187_v62  ;;  %v1189_v15 = vadd.f32 %v4672_v26, %v1004_v22  ;;  %v1667_v44 = vmul.f32 0.01, %v4175_v3  ;;  %vm1638_vm1 = vcmp.gt.f32.partialorder %v1606_v8, 0.0  ;;  %v4684_v22 = vld [vmem:[#allocation63_spill] sm:$0xff] }
 0x204   : > { %v1329_v51 = vadd.f32 %v4673_v40, %v1188_v11  ;;  %v1697_v2 = vsel %vm1633_vm15, %v4165_v35, %v1665_v1  ;;  %v1468_v7 = vadd.f32 %v4674_v45, %v1327_v39  ;;  %vm1640_vm2 = vcmp.gt.f32.partialorder %v1608_v50, 0.0  ;;  %v4685_v1 = vld [vmem:[#allocation74_spill] sm:$0xff] }
 0x205   : > { %v1330_v5 = vadd.f32 %v4675_v6, %v1189_v15  ;;  %v1699_v38 = vsel %vm1635_vm0, %v4175_v3, %v1667_v44  ;;  %v1469_v63 = vadd.f32 %v4676_v47, %v1328_v21  ;;  %v1007_v56 = vpop.f32.mrb[24].mxu1  ;;  %v1670_v59 = vmul.f32 0.01, %v1606_v8  ;;  %v4686_v21 = vld [vmem:[#allocation64_spill] sm:$0xff]  ;;  %v4687_v44 = vld [vmem:[#allocation78_spill] sm:$0xff] }
 0x206   : > { %v1470_v41 = vadd.f32 %v4677_v54, %v1329_v51  ;;  %v1723_v10 = vpack.c.bf16 %v1699_v38, %v1697_v2  ;;  %v4233_v36 = vadd.f32 %v4027_v37, %v1468_v7  ;;  %v1008_v60 = vadd.f32 %v1007_v56, %v3668_v17  ;;  %v1009_v35 = vpop.f32.mrb[25].mxu1  ;;  %v4688_v51 = vld [vmem:[#allocation75_spill] sm:$0xff]  ;;  %v4691_v47 = vld [vmem:[#allocation10_spill] sm:$0xff]  ;;  %v4692_v56 = vld [vmem:[#allocation8_spill] sm:$0xff] }
 0x207   : > { %v1471_v13 = vadd.f32 %v4678_v49, %v1330_v5  ;;  %v1610_v58 = vadd.f32 %v4030_v12, %v1469_v63  ;;  %v1010_v48 = vadd.f32 %v1009_v35, %v3928_v55  ;;  %v1011_v3 = vpop.f32.mrb[26].mxu1  ;;  %v1672_v16 = vmul.f32 0.01, %v1608_v50  ;;  %v4689_v7 = vld [vmem:[#allocation79_spill] sm:$0xff]  ;;  %v4694_v49 = vld [vmem:[#allocation77_spill] sm:$0xff] }
 0x208   : > { %v4240_v31 = vadd.f32 %v4679_v28, %v1470_v41  ;;  %1925 = vmatmul.mubr.bf16.gmra.mrb[44].mxu0 %v1723_v10  ;;  %v1673_v33 = vmul.f32 0.01, %v4233_v36  ;;  %v1190_v37 = vadd.f32 %v4680_v20, %v1008_v60  ;;  %v1012_v52 = vadd.f32 %v1011_v3, %v3668_v17  ;;  %v1013_v29 = vpop.f32.mrb[27].mxu1  ;;  %v4693_v60 = vld [vmem:[#allocation80_spill] sm:$0xff] }
 0x209   : > { %v1612_v19 = vadd.f32 %v4681_v4, %v1471_v13  ;;  %v1674_v43 = vmul.f32 0.01, %v1610_v58  ;;  %v1191_v12 = vadd.f32 %v4682_v34, %v1010_v48  ;;  %v1014_v27 = vadd.f32 %v1013_v29, %v3928_v55  ;;  %v4696_v4 = vld [vmem:[#allocation85_spill] sm:$0xff] }
 0x20a   : > { %v1331_v62 = vadd.f32 %v4683_v42, %v1190_v37  ;;  %v1192_v39 = vadd.f32 %v4684_v22, %v1012_v52  ;;  %v1702_v25 = vsel %vm1638_vm1, %v1606_v8, %v1670_v59  ;;  %v1704_v11 = vsel %vm1640_vm2, %v1608_v50, %v1672_v16  ;;  %v4690_v8 = vld [vmem:[#allocation76_spill] sm:$0xff]  ;;  %v4695_v37 = vld [vmem:[#allocation81_spill] sm:$0xff] }
 0x20b   : > { %v1332_v24 = vadd.f32 %v4685_v1, %v1191_v12  ;;  %v1193_v26 = vadd.f32 %v4686_v21, %v1014_v27  ;;  %v1726_v15 = vpack.c.bf16 %v1704_v11, %v1702_v25  ;;  %vm1637_vm3 = vcmp.gt.f32.partialorder %v4200_v32, 0.0  ;;  %v4697_v12 = vld [vmem:[#allocation82_spill] sm:$0xff]  ;;  %v4699_v11 = vld [vmem:[#allocation84_spill] sm:$0xff] }
 0x20c   : > { %v1472_v40 = vadd.f32 %v4687_v44, %v1331_v62  ;;  %v1333_v2 = vadd.f32 %v4688_v51, %v1192_v39  ;;  %vm1639_vm4 = vcmp.gt.f32.partialorder %v4210_v14, 0.0  ;;  %v1669_v45 = vmul.f32 0.01, %v4200_v32  ;;  %v4698_v62 = vld [vmem:[#allocation83_spill] sm:$0xff] }
 0x20d   : > { %v1473_v6 = vadd.f32 %v4689_v7, %v1332_v24  ;;  %v1334_v5 = vadd.f32 %v4690_v8, %v1193_v26  ;;  %1932 = vmatprep.mubr.bf16.mxu0 %v1726_v15  ;;  %v1671_v50 = vmul.f32 0.01, %v4210_v14  ;;  %v1017_v38 = vpop.f32.mrb[28].mxu1  ;;  %vm1642_vm5 = vcmp.gt.f32.partialorder %v1610_v58, 0.0  ;;  %v4701_v26 = vld [vmem:[#allocation11_spill] sm:$0xff] }
 0x20e   : > { %v1613_v63 = vadd.f32 %v4691_v47, %v1472_v40  ;;  %v1474_v59 = vadd.f32 %v4692_v56, %v1333_v2  ;;  %v1701_v54 = vsel %vm1637_vm3, %v4200_v32, %v1669_v45  ;;  %v1018_v41 = vadd.f32 %v1017_v38, %v3668_v17  ;;  %v1019_v10 = vpop.f32.mrb[29].mxu1  ;;  %v4702_v44 = vld [vmem:[#allocation87_spill] sm:$0xff] }
 0x20f   : > { %v1614_v35 = vadd.f32 %v4693_v60, %v1473_v6  ;;  %v1475_v13 = vadd.f32 %v4694_v49, %v1334_v5  ;;  %v1703_v48 = vsel %vm1639_vm4, %v4210_v14, %v1671_v50  ;;  %v1020_v3 = vadd.f32 %v1019_v10, %v3928_v55  ;;  %v1021_v16 = vpop.f32.mrb[30].mxu1 }
 0x210   : > { %v1615_v28 = vadd.f32 %v4034_v18, %v1474_v59  ;;  %v1725_v20 = vpack.c.bf16 %v1703_v48, %v1701_v54  ;;  %v1194_v52 = vadd.f32 %v4695_v37, %v1018_v41  ;;  %v1022_v29 = vadd.f32 %v1021_v16, %v3668_v17  ;;  %v1023_v32 = vpop.f32.mrb[31].mxu1  ;;  %v2809_v48 = vld [vmem:[%s4514_s9 + $0x30] sm:$0xff]  }
 0x211   : > { %v1616_v34 = vadd.f32 %v4696_v4, %v1475_v13  ;;  %v1195_v27 = vadd.f32 %v4697_v12, %v1020_v3  ;;  %v1024_v42 = vadd.f32 %v1023_v32, %v3928_v55  ;;  %vm1644_vm6 = vcmp.gt.f32.partialorder %v1612_v19, 0.0  ;;  %v4700_v55 = vld [vmem:[#allocation86_spill] sm:$0xff]  ;;  %v2810_v3 = vld [vmem:[%s4514_s9 + $0x38] sm:$0xff]  }
 0x212   : > { %1933 = vmatmul.mubr.bf16.gmra.mrb[48].mxu0 %v1725_v20  ;;  %v1335_v14 = vadd.f32 %v4060_v30, %v1194_v52  ;;  %v1196_v22 = vadd.f32 %v4698_v62, %v1022_v29  ;;  %v1676_v39 = vmul.f32 0.01, %v1612_v19  ;;  %v1706_v18 = vsel %vm1642_vm5, %v1610_v58, %v1674_v43  ;;  %v2808_v13 = vld [vmem:[%s4514_s9 + $0x28] sm:$0xff]  }
 0x213   : > { %v1336_v25 = vadd.f32 %v4063_v23, %v1195_v27  ;;  %v1197_v17 = vadd.f32 %v4699_v11, %v1024_v42  ;;  %vm1641_vm7 = vcmp.gt.f32.partialorder %v4233_v36, 0.0  ;;  %vm1643_vm8 = vcmp.gt.f32.partialorder %v4240_v31, 0.0 }
 0x214   : > { %v1476_v1 = vadd.f32 %v4052_v57, %v1335_v14  ;;  %v1337_v24 = vadd.f32 %v4700_v55, %v1196_v22  ;;  %v1708_v21 = vsel %vm1644_vm6, %v1612_v19, %v1676_v39  ;;  %v1675_v30 = vmul.f32 0.01, %v4240_v31 }
 0x215   : > { %v1477_v15 = vadd.f32 %v4701_v26, %v1336_v25  ;;  %v1338_v40 = vadd.f32 %v4702_v44, %v1197_v17  ;;  %v1728_v58 = vpack.c.bf16 %v1708_v21, %v1706_v18  ;;  %v1705_v23 = vsel %vm1641_vm7, %v4233_v36, %v1673_v33  ;;  %v4703_v36 = vld [vmem:[#allocation12_spill] sm:$0xff] }
 0x216   : > { %v1617_v43 = vadd.f32 %v4068_v46, %v1476_v1  ;;  %v1707_v51 = vsel %vm1643_vm8, %v4240_v31, %v1675_v30  ;;  %v1478_v2 = vadd.f32 %v4085_v0, %v1337_v24  ;;  %vm1646_vm9 = vcmp.gt.f32.partialorder %v1614_v35, 0.0 }
 0x217   : > { %v1618_v57 = vadd.f32 %v4071_v61, %v1477_v15  ;;  %1940 = vmatprep.mubr.bf16.mxu0 %v1728_v58  ;;  %v1727_v19 = vpack.c.bf16 %v1707_v51, %v1705_v23  ;;  %v1479_v45 = vadd.f32 %v4091_v9, %v1338_v40  ;;  %vm1648_vm10 = vcmp.gt.f32.partialorder %v1616_v34, 0.0 }
 0x218   : > { %v1619_v7 = vadd.f32 %v4076_v53, %v1478_v2  ;;  %v1678_v6 = vmul.f32 0.01, %v1614_v35  ;;  %v1680_v8 = vmul.f32 0.01, %v1616_v34  ;;  %vm1645_vm11 = vcmp.gt.f32.partialorder %v1613_v63, 0.0 }
 0x219   : > { %v1620_v33 = vadd.f32 %v4703_v36, %v1479_v45  ;;  %vm1647_vm12 = vcmp.gt.f32.partialorder %v1615_v28, 0.0  ;;  %v1677_v46 = vmul.f32 0.01, %v1613_v63  ;;  %v1679_v31 = vmul.f32 0.01, %v1615_v28 }
 0x21a   : > { %1941 = vmatmul.mubr.bf16.gmra.mrb[52].mxu0 %v1727_v19  ;;  %v1710_v0 = vsel %vm1646_vm9, %v1614_v35, %v1678_v6  ;;  %v1712_v5 = vsel %vm1648_vm10, %v1616_v34, %v1680_v8  ;;  %vm1650_vm13 = vcmp.gt.f32.partialorder %v1618_v57, 0.0  ;;  %v1682_v61 = vmul.f32 0.01, %v1618_v57 }
 0x21b   : > { %v1730_v50 = vpack.c.bf16 %v1712_v5, %v1710_v0  ;;  %v1709_v38 = vsel %vm1645_vm11, %v1613_v63, %v1677_v46  ;;  %v1711_v47 = vsel %vm1647_vm12, %v1615_v28, %v1679_v31  ;;  %vm1652_vm14 = vcmp.gt.f32.partialorder %v1620_v33, 0.0  ;;  %v2807_v63 = vld [vmem:[%s4514_s9 + $0x20] sm:$0xff]  }
 0x21c   : > { %v1729_v9 = vpack.c.bf16 %v1711_v47, %v1709_v38  ;;  %v1684_v56 = vmul.f32 0.01, %v1620_v33  ;;  %vm1649_vm15 = vcmp.gt.f32.partialorder %v1617_v43, 0.0  ;;  %vm1651_vm0 = vcmp.gt.f32.partialorder %v1619_v7, 0.0  ;;  %2611 = vmatprep.subr.bf16.mxu0 %v2807_v63  ;;  %2639 = vmatprep.subr.bf16.mxu1 %v2807_v63  ;;  %v4311_v28 = vld [vmem:[%s4513_s8] ss:$0 sm:$0xff] }
 0x21d   : > { %1948 = vmatprep.mubr.bf16.mxu0 %v1730_v50  ;;  %v1681_v53 = vmul.f32 0.01, %v1617_v43  ;;  %v1683_v59 = vmul.f32 0.01, %v1619_v7  ;;  %v1714_v54 = vsel %vm1650_vm13, %v1618_v57, %v1682_v61  ;;  %2612 = vmatpush3.bf16.msra.mxu0 %v2807_v63 }
 0x21e   : > { %v1716_v41 = vsel %vm1652_vm14, %v1620_v33, %v1684_v56  ;;  %2647 = vmatpush3.bf16.msra.mxu1 %v2807_v63  ;;  %2613 = vmatprep.subr.bf16.mxu0 %v2808_v13 }
 0x21f   : > { %v1732_v10 = vpack.c.bf16 %v1716_v41, %v1714_v54  ;;  %v1713_v60 = vsel %vm1649_vm15, %v1617_v43, %v1681_v53  ;;  %v1715_v49 = vsel %vm1651_vm0, %v1619_v7, %v1683_v59  ;;  %2640 = vmatprep.subr.bf16.mxu1 %v2808_v13 }
 0x220   : > { %v1731_v35 = vpack.c.bf16 %v1715_v49, %v1713_v60 }
 0x221   : > { %2614 = vmatpush3.bf16.msra.mxu0 %v2808_v13 }
 0x222   : > { %1949 = vmatmul.mubr.bf16.gmra.mrb[56].mxu0 %v1729_v9  ;;  %2648 = vmatpush3.bf16.msra.mxu1 %v2808_v13 }
 0x223   : > { %1956 = vmatprep.mubr.bf16.mxu0 %v1732_v10  ;;  %2615 = vmatprep.subr.bf16.mxu0 %v2809_v48 }
 0x224   : > { %2641 = vmatprep.subr.bf16.mxu1 %v2809_v48 }
 0x225   : > { %2616 = vmatpush3.bf16.msra.mxu0 %v2809_v48 }
 0x226   : > { %2649 = vmatpush3.bf16.msra.mxu1 %v2809_v48  ;;  %2617 = vmatprep.subr.bf16.mxu0 %v2810_v3 }
 0x227   : > { %2642 = vmatprep.subr.bf16.mxu1 %v2810_v3 }
 0x229   : > { %2618 = vmatpush3.bf16.msra.mxu0 %v2810_v3 }
 0x22a   : > { %1957 = vmatmul.mubr.bf16.gmra.mrb[60].mxu0 %v1731_v35  ;;  %2650 = vmatpush3.bf16.msra.mxu1 %v2810_v3 }
 0x2be   : > { %v2539_v16 = vpop.f32.mrb[32].mxu0 }
 0x2bf   : > { %v2540_v20 = vpop.f32.mrb[33].mxu0 }
 0x2c0   : > { %v2541_v37 = vadd.f32 %v2540_v20, %v2539_v16  ;;  %v2542_v52 = vpop.f32.mrb[34].mxu0 }
 0x2c1   : > { %v2543_v29 = vpop.f32.mrb[35].mxu0 }
 0x2c2   : > { %v1903_v32 = vadd.f32 %v2541_v37, %v4311_v28  ;;  %v2544_v4 = vadd.f32 %v2543_v29, %v2542_v52 }
 0x2c4   : > { %v1981_v34 = vmul.f32 0.01, %v1903_v32  ;;  %v1906_v12 = vadd.f32 %v2544_v4, %v4311_v28  ;;  %vm1965_vm1 = vcmp.gt.f32.partialorder %v1903_v32, 0.0 }
 0x2c6   : > { %vm1966_vm2 = vcmp.gt.f32.partialorder %v1906_v12, 0.0  ;;  %v1982_v27 = vmul.f32 0.01, %v1906_v12  ;;  %v1997_v14 = vsel %vm1965_vm1, %v1903_v32, %v1981_v34 }
 0x2c8   : > { %v2545_v42 = vpop.f32.mrb[36].mxu0  ;;  %v1998_v62 = vsel %vm1966_vm2, %v1906_v12, %v1982_v27 }
 0x2c9   : > { %v2546_v22 = vpop.f32.mrb[37].mxu0  ;;  %v2013_v39 = vpack.c.bf16 %v1998_v62, %v1997_v14 }
 0x2ca   : > { %v2547_v18 = vadd.f32 %v2546_v22, %v2545_v42  ;;  %v2548_v25 = vpop.f32.mrb[38].mxu0 }
 0x2cb   : > { %v2549_v11 = vpop.f32.mrb[39].mxu0  ;;  %2619 = vmatprep.mubr.bf16.mxu0 %v2013_v39 }
 0x2cc   : > { %v1911_v17 = vadd.f32 %v2547_v18, %v4311_v28  ;;  %v2550_v1 = vadd.f32 %v2549_v11, %v2548_v25 }
 0x2ce   : > { %v1983_v55 = vmul.f32 0.01, %v1911_v17  ;;  %v1914_v24 = vadd.f32 %v2550_v1, %v4311_v28  ;;  %vm1967_vm3 = vcmp.gt.f32.partialorder %v1911_v17, 0.0 }
 0x2d0   : > { %vm1968_vm4 = vcmp.gt.f32.partialorder %v1914_v24, 0.0  ;;  %v1984_v21 = vmul.f32 0.01, %v1914_v24  ;;  %v1999_v30 = vsel %vm1967_vm3, %v1911_v17, %v1983_v55 }
 0x2d2   : > { %v2000_v26 = vsel %vm1968_vm4, %v1914_v24, %v1984_v21  ;;  %v2551_v15 = vpop.f32.mrb[40].mxu0 }
 0x2d3   : > { %v2014_v44 = vpack.c.bf16 %v2000_v26, %v1999_v30  ;;  %v2552_v40 = vpop.f32.mrb[41].mxu0 }
 0x2d4   : > { %v2553_v58 = vadd.f32 %v2552_v40, %v2551_v15  ;;  %v2554_v23 = vpop.f32.mrb[42].mxu0 }
 0x2d5   : > { %v2555_v43 = vpop.f32.mrb[43].mxu0  ;;  %2620 = vmatmul.mubr.bf16.vlgmr.msra.gmra.mrb[64].mxu0 %v2014_v44 }
 0x2d6   : > { %v1919_v51 = vadd.f32 %v2553_v58, %v4311_v28  ;;  %v2556_v2 = vadd.f32 %v2555_v43, %v2554_v23 }
 0x2d8   : > { %v1985_v57 = vmul.f32 0.01, %v1919_v51  ;;  %v1922_v19 = vadd.f32 %v2556_v2, %v4311_v28  ;;  %vm1969_vm5 = vcmp.gt.f32.partialorder %v1919_v51, 0.0 }
 0x2da   : > { %vm1970_vm6 = vcmp.gt.f32.partialorder %v1922_v19, 0.0  ;;  %v1986_v45 = vmul.f32 0.01, %v1922_v19  ;;  %v2001_v8 = vsel %vm1969_vm5, %v1919_v51, %v1985_v57 }
 0x2db   : > { %v2557_v7 = vpop.f32.mrb[44].mxu0 }
 0x2dc   : > { %v2558_v6 = vpop.f32.mrb[45].mxu0  ;;  %v2002_v36 = vsel %vm1970_vm6, %v1922_v19, %v1986_v45 }
 0x2dd   : > { %v2559_v33 = vadd.f32 %v2558_v6, %v2557_v7  ;;  %v2560_v46 = vpop.f32.mrb[46].mxu0  ;;  %v2015_v31 = vpack.c.bf16 %v2002_v36, %v2001_v8 }
 0x2de   : > { %v2561_v0 = vpop.f32.mrb[47].mxu0 }
 0x2df   : > { %v1927_v5 = vadd.f32 %v2559_v33, %v4311_v28  ;;  %v2562_v61 = vadd.f32 %v2561_v0, %v2560_v46  ;;  %2623 = vmatprep.mubr.bf16.mxu1 %v2015_v31  ;;  %v2508_v46 = vld [vmem:[%s4515_s10] ss:$0 sm:$0xff] }
 0x2e1   : > { %v1987_v50 = vmul.f32 0.01, %v1927_v5  ;;  %v1930_v38 = vadd.f32 %v2562_v61, %v4311_v28  ;;  %vm1971_vm7 = vcmp.gt.f32.partialorder %v1927_v5, 0.0 }
 0x2e3   : > { %vm1972_vm8 = vcmp.gt.f32.partialorder %v1930_v38, 0.0  ;;  %v1988_v47 = vmul.f32 0.01, %v1930_v38  ;;  %v2003_v9 = vsel %vm1971_vm7, %v1927_v5, %v1987_v50 }
 0x2e5   : > { %v2004_v56 = vsel %vm1972_vm8, %v1930_v38, %v1988_v47  ;;  %v2563_v53 = vpop.f32.mrb[48].mxu0 }
 0x2e6   : > { %v2016_v59 = vpack.c.bf16 %v2004_v56, %v2003_v9  ;;  %v2564_v54 = vpop.f32.mrb[49].mxu0 }
 0x2e7   : > { %v2565_v41 = vadd.f32 %v2564_v54, %v2563_v53  ;;  %v2566_v10 = vpop.f32.mrb[50].mxu0 }
 0x2e8   : > { %v2567_v60 = vpop.f32.mrb[51].mxu0  ;;  %2624 = vmatmul.mubr.bf16.vlgmr.msra.gmra.mrb[32].mxu1 %v2016_v59 }
 0x2e9   : > { %v1935_v49 = vadd.f32 %v2565_v41, %v4311_v28  ;;  %v2568_v35 = vadd.f32 %v2567_v60, %v2566_v10 }
 0x2eb   : > { %v1989_v63 = vmul.f32 0.01, %v1935_v49  ;;  %v1938_v13 = vadd.f32 %v2568_v35, %v4311_v28  ;;  %vm1973_vm9 = vcmp.gt.f32.partialorder %v1935_v49, 0.0 }
 0x2ed   : > { %vm1974_vm10 = vcmp.gt.f32.partialorder %v1938_v13, 0.0  ;;  %v1990_v48 = vmul.f32 0.01, %v1938_v13  ;;  %v2569_v3 = vpop.f32.mrb[52].mxu0  ;;  %v2005_v52 = vsel %vm1973_vm9, %v1935_v49, %v1989_v63 }
 0x2ee   : > { %v2570_v16 = vpop.f32.mrb[53].mxu0 }
 0x2ef   : > { %v2571_v20 = vadd.f32 %v2570_v16, %v2569_v3  ;;  %v2572_v37 = vpop.f32.mrb[54].mxu0  ;;  %v2006_v29 = vsel %vm1974_vm10, %v1938_v13, %v1990_v48 }
 0x2f0   : > { %v2573_v32 = vpop.f32.mrb[55].mxu0  ;;  %v2017_v4 = vpack.c.bf16 %v2006_v29, %v2005_v52 }
 0x2f1   : > { %v1943_v34 = vadd.f32 %v2571_v20, %v4311_v28  ;;  %v2574_v12 = vadd.f32 %v2573_v32, %v2572_v37 }
 0x2f2   : > { %2627 = vmatprep.mubr.bf16.mxu1 %v2017_v4 }
 0x2f3   : > { %v1991_v27 = vmul.f32 0.01, %v1943_v34  ;;  %v1946_v42 = vadd.f32 %v2574_v12, %v4311_v28  ;;  %vm1975_vm11 = vcmp.gt.f32.partialorder %v1943_v34, 0.0 }
 0x2f5   : > { %vm1976_vm12 = vcmp.gt.f32.partialorder %v1946_v42, 0.0  ;;  %v1992_v14 = vmul.f32 0.01, %v1946_v42  ;;  %v2575_v62 = vpop.f32.mrb[56].mxu0  ;;  %v2007_v25 = vsel %vm1975_vm11, %v1943_v34, %v1991_v27 }
 0x2f6   : > { %v2576_v22 = vpop.f32.mrb[57].mxu0 }
 0x2f7   : > { %v2577_v39 = vadd.f32 %v2576_v22, %v2575_v62  ;;  %v2578_v18 = vpop.f32.mrb[58].mxu0  ;;  %v2008_v11 = vsel %vm1976_vm12, %v1946_v42, %v1992_v14 }
 0x2f8   : > { %v2579_v17 = vpop.f32.mrb[59].mxu0  ;;  %v2018_v1 = vpack.c.bf16 %v2008_v11, %v2007_v25 }
 0x2f9   : > { %v1951_v55 = vadd.f32 %v2577_v39, %v4311_v28  ;;  %v2580_v24 = vadd.f32 %v2579_v17, %v2578_v18 }
 0x2fa   : > { %2628 = vmatmul.mubr.bf16.gmra.mrb[36].mxu1 %v2018_v1 }
 0x2fb   : > { %v1993_v21 = vmul.f32 0.01, %v1951_v55  ;;  %v1954_v30 = vadd.f32 %v2580_v24, %v4311_v28  ;;  %vm1977_vm13 = vcmp.gt.f32.partialorder %v1951_v55, 0.0 }
 0x2fd   : > { %vm1978_vm14 = vcmp.gt.f32.partialorder %v1954_v30, 0.0  ;;  %v1994_v26 = vmul.f32 0.01, %v1954_v30  ;;  %v2581_v15 = vpop.f32.mrb[60].mxu0  ;;  %v2009_v23 = vsel %vm1977_vm13, %v1951_v55, %v1993_v21 }
 0x2fe   : > { %v2582_v44 = vpop.f32.mrb[61].mxu0 }
 0x2ff   : > { %v2583_v40 = vadd.f32 %v2582_v44, %v2581_v15  ;;  %v2584_v58 = vpop.f32.mrb[62].mxu0  ;;  %v2010_v43 = vsel %vm1978_vm14, %v1954_v30, %v1994_v26 }
 0x300   : > { %v2585_v51 = vpop.f32.mrb[63].mxu0  ;;  %v2019_v2 = vpack.c.bf16 %v2010_v43, %v2009_v23 }
 0x301   : > { %v1959_v57 = vadd.f32 %v2583_v40, %v4311_v28  ;;  %v2586_v19 = vadd.f32 %v2585_v51, %v2584_v58 }
 0x302   : > { %2631 = vmatprep.mubr.bf16.mxu1 %v2019_v2 }
 0x303   : > { %v1995_v45 = vmul.f32 0.01, %v1959_v57  ;;  %v1962_v7 = vadd.f32 %v2586_v19, %v4311_v28  ;;  %vm1979_vm15 = vcmp.gt.f32.partialorder %v1959_v57, 0.0 }
 0x305   : > { %vm1980_vm0 = vcmp.gt.f32.partialorder %v1962_v7, 0.0  ;;  %v1996_v6 = vmul.f32 0.01, %v1962_v7  ;;  %v2011_v8 = vsel %vm1979_vm15, %v1959_v57, %v1995_v45 }
 0x307   : > { %v2012_v36 = vsel %vm1980_vm0, %v1962_v7, %v1996_v6 }
 0x308   : > { %v2020_v33 = vpack.c.bf16 %v2012_v36, %v2011_v8 }
 0x30a   : > { %2632 = vmatmul.mubr.bf16.gmra.mrb[40].mxu1 %v2020_v33 }
 0x3a8   : > { %v2621_v31 = vpop.f32.mrb[64].mxu0 }
 0x3a9   : > { %v2135_v0 = vadd.f32 %v2621_v31, %v2508_v46  ;;  %v2126_v5 = vpop.f32.mrb[65].mxu0 }
 0x3aa   : > { %v2622_v61 = vpop.f32.mrb[66].mxu0  ;;  %v2127_v47 = vadd.f32 %v2508_v46, %v2126_v5 }
 0x3ab   : > { %2193 = vmax.xlane.f32.xlu0 %v2135_v0  ;;  %v2129_v50 = vpop.f32.mrb[67].mxu0  ;;  %v2138_v28 = vadd.f32 %v2622_v61, %v2508_v46 }
 0x3ac   : > { %v2130_v38 = vadd.f32 %v2508_v46, %v2129_v50 }
 0x3ae   : > { %2191 = vmax.xlane.f32.xlu1 %v2130_v38 }
 0x3af   : > { %2189 = vmax.xlane.f32.xlu0 %v2127_v47 }
 0x3b3   : > { %2195 = vmax.xlane.f32.xlu0 %v2138_v28 }
 0x3bb   : > { %v2625_v9 = vpop.f32.mrb[32].mxu1 }
 0x3bc   : > { %v2151_v56 = vadd.f32 %v2625_v9, %v2508_v46  ;;  %v2142_v53 = vpop.f32.mrb[33].mxu1 }
 0x3bd   : > { %v2626_v59 = vpop.f32.mrb[34].mxu1  ;;  %v2143_v10 = vadd.f32 %v2508_v46, %v2142_v53 }
 0x3be   : > { %v2154_v54 = vadd.f32 %v2626_v59, %v2508_v46  ;;  %v2145_v41 = vpop.f32.mrb[35].mxu1  ;;  %2201 = vmax.xlane.f32.xlu1 %v2151_v56 }
 0x3bf   : > { %v4332_v60 = vadd.f32 %v2508_v46, %v2145_v41 }
 0x3c0   : > { %2203 = vmax.xlane.f32.xlu0 %v2154_v54 }
 0x3c2   : > { %2197 = vmax.xlane.f32.xlu1 %v2143_v10 }
 0x3c4   : > { %2199 = vmax.xlane.f32.xlu0 %v4332_v60 }
 0x3cd   : > { %v2629_v49 = vpop.f32.mrb[36].mxu1 }
 0x3ce   : > { %v4335_v35 = vadd.f32 %v2629_v49, %v2508_v46  ;;  %v2158_v63 = vpop.f32.mrb[37].mxu1 }
 0x3cf   : > { %v2630_v13 = vpop.f32.mrb[38].mxu1  ;;  %v4340_v16 = vadd.f32 %v2508_v46, %v2158_v63 }
 0x3d0   : > { %v4337_v48 = vadd.f32 %v2630_v13, %v2508_v46  ;;  %v2161_v3 = vpop.f32.mrb[39].mxu1  ;;  %2209 = vmax.xlane.f32.xlu1 %v4335_v35 }
 0x3d1   : > { %v4343_v20 = vadd.f32 %v2508_v46, %v2161_v3 }
 0x3d2   : > { %2211 = vmax.xlane.f32.xlu0 %v4337_v48 }
 0x3d4   : > { %2205 = vmax.xlane.f32.xlu1 %v4340_v16 }
 0x3d6   : > { %2207 = vmax.xlane.f32.xlu0 %v4343_v20 }
 0x3dd   : > { %v2633_v37 = vpop.f32.mrb[40].mxu1 }
 0x3de   : > { %v2174_v52 = vpop.f32.mrb[41].mxu1  ;;  %v4352_v12 = vadd.f32 %v2633_v37, %v2508_v46 }
 0x3df   : > { %v4347_v29 = vadd.f32 %v2508_v46, %v2174_v52  ;;  %v2634_v32 = vpop.f32.mrb[42].mxu1 }
 0x3e0   : > { %v2177_v4 = vpop.f32.mrb[43].mxu1  ;;  %v4355_v27 = vadd.f32 %v2634_v32, %v2508_v46 }
 0x3e1   : > { %v4349_v34 = vadd.f32 %v2508_v46, %v2177_v4  ;;  %2213 = vmax.xlane.f32.xlu1 %v4347_v29 }
 0x3e3   : > { %2215 = vmax.xlane.f32.xlu0 %v4349_v34 }
 0x3e5   : > { %2217 = vmax.xlane.f32.xlu1 %v4352_v12 }
 0x3e7   : > { %2219 = vmax.xlane.f32.xlu0 %v4355_v27 }
 0x438   : > { %v2194_v42 = vpop.xlane.xlu0 %2193 }
 0x439   : > { %v2223_v14 = vsub.f32 %v2135_v0, %v2194_v42 }
 0x43b   : > { %v2241_v62 = vmul.f32 1.442695, %v2223_v14  ;;  %v2192_v18 = vpop.xlane.xlu1 %2191 }
 0x43c   : > { %v2190_v22 = vpop.xlane.xlu0 %2189  ;;  %v2222_v17 = vsub.f32 %v2130_v38, %v2192_v18 }
 0x43d   : > { %2811 = vpow2.f32 %v2241_v62  ;;  %v2221_v39 = vsub.f32 %v2127_v47, %v2190_v22 }
 0x43e   : > { %v2239_v24 = vmul.f32 1.442695, %v2222_v17 }
 0x43f   : > { %v2237_v25 = vmul.f32 1.442695, %v2221_v39 }
 0x440   : > { %v2196_v11 = vpop.xlane.xlu0 %2195 }
 0x441   : > { %2813 = vpow2.f32 %v2237_v25  ;;  %v2224_v1 = vsub.f32 %v2138_v28, %v2196_v11 }
 0x443   : > { %v2243_v55 = vmul.f32 1.442695, %v2224_v1 }
 0x445   : > { %2815 = vpow2.f32 %v2243_v55 }
 0x446   : > { %2817 = vpow2.f32 %v2239_v24 }
 0x447   : > { %v4359_v21 = vpop.eup %2811 }
 0x448   : > { %2273 = vadd.xlane.f32.xlu1 %v4359_v21 }
 0x44b   : > { %v4362_v30 = vpop.eup %2813  ;;  %v2202_v26 = vpop.xlane.xlu1 %2201 }
 0x44c   : > { %v2227_v15 = vsub.f32 %v2151_v56, %v2202_v26  ;;  %2269 = vadd.xlane.f32.xlu1 %v4362_v30 }
 0x44d   : > { %v2204_v44 = vpop.xlane.xlu0 %2203 }
 0x44e   : > { %v2249_v40 = vmul.f32 1.442695, %v2227_v15  ;;  %v2228_v58 = vsub.f32 %v2154_v54, %v2204_v44 }
 0x44f   : > { %v4365_v23 = vpop.eup %2815  ;;  %v2198_v43 = vpop.xlane.xlu1 %2197 }
 0x450   : > { %2819 = vpow2.f32 %v2249_v40  ;;  %v2251_v51 = vmul.f32 1.442695, %v2228_v58  ;;  %v2225_v2 = vsub.f32 %v2143_v10, %v2198_v43  ;;  %2275 = vadd.xlane.f32.xlu0 %v4365_v23  ;;  %v4369_v7 = vpop.eup %2817 }
 0x451   : > { %v2200_v57 = vpop.xlane.xlu0 %2199 }
 0x452   : > { %2821 = vpow2.f32 %v2251_v51  ;;  %v2245_v19 = vmul.f32 1.442695, %v2225_v2  ;;  %v2226_v45 = vsub.f32 %v4332_v60, %v2200_v57 }
 0x454   : > { %2823 = vpow2.f32 %v2245_v19  ;;  %v2247_v6 = vmul.f32 1.442695, %v2226_v45  ;;  %2271 = vadd.xlane.f32.xlu0 %v4369_v7 }
 0x456   : > { %2825 = vpow2.f32 %v2247_v6 }
 0x45a   : > { %v4372_v8 = vpop.eup %2819 }
 0x45b   : > { %2281 = vadd.xlane.f32.xlu1 %v4372_v8 }
 0x45c   : > { %v4375_v36 = vpop.eup %2821 }
 0x45d   : > { %v2210_v33 = vpop.xlane.xlu1 %2209  ;;  %2283 = vadd.xlane.f32.xlu0 %v4375_v36 }
 0x45e   : > { %v4378_v46 = vpop.eup %2823  ;;  %v2231_v31 = vsub.f32 %v4335_v35, %v2210_v33 }
 0x45f   : > { %v2212_v0 = vpop.xlane.xlu0 %2211  ;;  %2277 = vadd.xlane.f32.xlu1 %v4378_v46 }
 0x460   : > { %v4382_v5 = vpop.eup %2825  ;;  %v2257_v61 = vmul.f32 1.442695, %v2231_v31  ;;  %v2232_v50 = vsub.f32 %v4337_v48, %v2212_v0 }
 0x461   : > { %v2206_v38 = vpop.xlane.xlu1 %2205  ;;  %2279 = vadd.xlane.f32.xlu0 %v4382_v5 }
 0x462   : > { %2827 = vpow2.f32 %v2257_v61  ;;  %v2259_v47 = vmul.f32 1.442695, %v2232_v50  ;;  %v2229_v28 = vsub.f32 %v4340_v16, %v2206_v38 }
 0x463   : > { %v2208_v9 = vpop.xlane.xlu0 %2207 }
 0x464   : > { %2829 = vpow2.f32 %v2259_v47  ;;  %v2253_v56 = vmul.f32 1.442695, %v2229_v28  ;;  %v2230_v53 = vsub.f32 %v4343_v20, %v2208_v9 }
 0x466   : > { %2831 = vpow2.f32 %v2253_v56  ;;  %v2255_v59 = vmul.f32 1.442695, %v2230_v53 }
 0x468   : > { %2833 = vpow2.f32 %v2255_v59 }
 0x46c   : > { %v4388_v54 = vpop.eup %2827 }
 0x46d   : > { %2289 = vadd.xlane.f32.xlu1 %v4388_v54 }
 0x46e   : > { %v4391_v41 = vpop.eup %2829  ;;  %v2214_v10 = vpop.xlane.xlu1 %2213 }
 0x46f   : > { %v2233_v60 = vsub.f32 %v4347_v29, %v2214_v10  ;;  %2291 = vadd.xlane.f32.xlu0 %v4391_v41 }
 0x470   : > { %v4395_v49 = vpop.eup %2831  ;;  %v2216_v35 = vpop.xlane.xlu0 %2215 }
 0x471   : > { %v2261_v63 = vmul.f32 1.442695, %v2233_v60  ;;  %v2234_v13 = vsub.f32 %v4349_v34, %v2216_v35  ;;  %2285 = vadd.xlane.f32.xlu1 %v4395_v49 }
 0x472   : > { %v4399_v48 = vpop.eup %2833  ;;  %v2218_v3 = vpop.xlane.xlu1 %2217 }
 0x473   : > { %2835 = vpow2.f32 %v2261_v63  ;;  %v2263_v16 = vmul.f32 1.442695, %v2234_v13  ;;  %v2235_v20 = vsub.f32 %v4352_v12, %v2218_v3  ;;  %2287 = vadd.xlane.f32.xlu0 %v4399_v48 }
 0x474   : > { %v2220_v37 = vpop.xlane.xlu0 %2219 }
 0x475   : > { %2837 = vpow2.f32 %v2263_v16  ;;  %v2265_v52 = vmul.f32 1.442695, %v2235_v20  ;;  %v2236_v29 = vsub.f32 %v4355_v27, %v2220_v37 }
 0x477   : > { %2839 = vpow2.f32 %v2265_v52  ;;  %v2267_v32 = vmul.f32 1.442695, %v2236_v29 }
 0x479   : > { %2841 = vpow2.f32 %v2267_v32 }
 0x47d   : > { %v4404_v4 = vpop.eup %2835 }
 0x47e   : > { %2293 = vadd.xlane.f32.xlu1 %v4404_v4 }
 0x47f   : > { %v4407_v34 = vpop.eup %2837 }
 0x480   : > { %2295 = vadd.xlane.f32.xlu0 %v4407_v34 }
 0x481   : > { %v4410_v12 = vpop.eup %2839 }
 0x482   : > { %2297 = vadd.xlane.f32.xlu1 %v4410_v12 }
 0x483   : > { %v4413_v42 = vpop.eup %2841 }
 0x484   : > { %2299 = vadd.xlane.f32.xlu0 %v4413_v42 }
 0x4d5   : > { %v2274_v27 = vpop.xlane.xlu1 %2273 }
 0x4d6   : > { %2843 = vrcp.f32 %v2274_v27 }
 0x4d9   : > { %v2270_v14 = vpop.xlane.xlu1 %2269 }
 0x4da   : > { %2845 = vrcp.f32 %v2270_v14 }
 0x4dd   : > { %v2276_v62 = vpop.xlane.xlu0 %2275 }
 0x4de   : > { %2847 = vrcp.f32 %v2276_v62 }
 0x4e0   : > { %v2844_v22 = vpop.eup %2843 }
 0x4e1   : > { %v2306_v39 = vmul.f32 %v2844_v22, %v4359_v21  ;;  %v2272_v18 = vpop.xlane.xlu0 %2271 }
 0x4e2   : > { %2849 = vrcp.f32 %v2272_v18 }
 0x4e3   : > { %2335 = vst [vmem:[%s4420_s30 + $0x10] sm:$0xff] %v2306_v39 }
 0x4e4   : > { %v2846_v25 = vpop.eup %2845 }
 0x4e5   : > { %v2302_v11 = vmul.f32 %v2846_v25, %v4362_v30 }
 0x4e7   : > { %2333 = vst [vmem:[%s4420_s30] sm:$0xff] %v2302_v11 }
 0x4e8   : > { %v2848_v17 = vpop.eup %2847  ;;  %v2282_v1 = vpop.xlane.xlu1 %2281 }
 0x4e9   : > { %v2308_v55 = vmul.f32 %v2848_v17, %v4365_v23  ;;  %2851 = vrcp.f32 %v2282_v1 }
 0x4ea   : > { %v2284_v24 = vpop.xlane.xlu0 %2283 }
 0x4eb   : > { %2336 = vst [vmem:[%s4420_s30 + $0x18] sm:$0xff] %v2308_v55  ;;  %2853 = vrcp.f32 %v2284_v24 }
 0x4ec   : > { %v2850_v21 = vpop.eup %2849  ;;  %v2278_v26 = vpop.xlane.xlu1 %2277 }
 0x4ed   : > { %v2304_v15 = vmul.f32 %v2850_v21, %v4369_v7  ;;  %2855 = vrcp.f32 %v2278_v26 }
 0x4ee   : > { %v2280_v44 = vpop.xlane.xlu0 %2279 }
 0x4ef   : > { %2334 = vst [vmem:[%s4420_s30 + $0x8] sm:$0xff] %v2304_v15  ;;  %2857 = vrcp.f32 %v2280_v44 }
 0x4f3   : > { %v2852_v30 = vpop.eup %2851 }
 0x4f4   : > { %v2314_v40 = vmul.f32 %v2852_v30, %v4372_v8 }
 0x4f5   : > { %v2854_v58 = vpop.eup %2853 }
 0x4f6   : > { %2339 = vst [vmem:[%s4420_s30 + $0x30] sm:$0xff] %v2314_v40  ;;  %v2316_v23 = vmul.f32 %v2854_v58, %v4375_v36 }
 0x4f7   : > { %v2856_v43 = vpop.eup %2855 }
 0x4f8   : > { %2340 = vst [vmem:[%s4420_s30 + $0x38] sm:$0xff] %v2316_v23  ;;  %v2310_v51 = vmul.f32 %v2856_v43, %v4378_v46 }
 0x4f9   : > { %v2858_v2 = vpop.eup %2857 }
 0x4fa   : > { %2337 = vst [vmem:[%s4420_s30 + $0x20] sm:$0xff] %v2310_v51  ;;  %v2312_v57 = vmul.f32 %v2858_v2, %v4382_v5  ;;  %v2290_v19 = vpop.xlane.xlu1 %2289 }
 0x4fb   : > { %2859 = vrcp.f32 %v2290_v19 }
 0x4fc   : > { %2338 = vst [vmem:[%s4420_s30 + $0x28] sm:$0xff] %v2312_v57  ;;  %v2292_v45 = vpop.xlane.xlu0 %2291 }
 0x4fd   : > { %2861 = vrcp.f32 %v2292_v45 }
 0x4fe   : > { %v2286_v7 = vpop.xlane.xlu1 %2285 }
 0x4ff   : > { %2863 = vrcp.f32 %v2286_v7 }
 0x500   : > { %v2288_v6 = vpop.xlane.xlu0 %2287 }
 0x501   : > { %2865 = vrcp.f32 %v2288_v6 }
 0x505   : > { %v2860_v8 = vpop.eup %2859 }
 0x506   : > { %v2322_v36 = vmul.f32 %v2860_v8, %v4388_v54 }
 0x507   : > { %v2862_v33 = vpop.eup %2861 }
 0x508   : > { %2343 = vst [vmem:[%s4420_s30 + $0x50] sm:$0xff] %v2322_v36  ;;  %v2324_v46 = vmul.f32 %v2862_v33, %v4391_v41 }
 0x509   : > { %v2864_v31 = vpop.eup %2863 }
 0x50a   : > { %2344 = vst [vmem:[%s4420_s30 + $0x58] sm:$0xff] %v2324_v46  ;;  %v2318_v0 = vmul.f32 %v2864_v31, %v4395_v49 }
 0x50b   : > { %v2866_v5 = vpop.eup %2865  ;;  %v2294_v61 = vpop.xlane.xlu1 %2293 }
 0x50c   : > { %2341 = vst [vmem:[%s4420_s30 + $0x40] sm:$0xff] %v2318_v0  ;;  %v2320_v50 = vmul.f32 %v2866_v5, %v4399_v48  ;;  %2867 = vrcp.f32 %v2294_v61 }
 0x50d   : > { %v2296_v38 = vpop.xlane.xlu0 %2295 }
 0x50e   : > { %2342 = vst [vmem:[%s4420_s30 + $0x48] sm:$0xff] %v2320_v50  ;;  %2869 = vrcp.f32 %v2296_v38 }
 0x50f   : > { %v2298_v47 = vpop.xlane.xlu1 %2297 }
 0x510   : > { %2871 = vrcp.f32 %v2298_v47 }
 0x511   : > { %v2300_v28 = vpop.xlane.xlu0 %2299 }
 0x512   : > { %2873 = vrcp.f32 %v2300_v28 }
 0x516   : > { %v2868_v9 = vpop.eup %2867 }
 0x517   : > { %v2326_v56 = vmul.f32 %v2868_v9, %v4404_v4 }
 0x518   : > { %v2870_v53 = vpop.eup %2869 }
 0x519   : > { %2345 = vst [vmem:[%s4420_s30 + $0x60] sm:$0xff] %v2326_v56  ;;  %v2328_v59 = vmul.f32 %v2870_v53, %v4407_v34 }
 0x51a   : > { %v2872_v54 = vpop.eup %2871 }
 0x51b   : > { %2346 = vst [vmem:[%s4420_s30 + $0x68] sm:$0xff] %v2328_v59  ;;  %v2330_v41 = vmul.f32 %v2872_v54, %v4410_v12 }
 0x51c   : > { %v2874_v10 = vpop.eup %2873 }
 0x51d   : > { %2347 = vst [vmem:[%s4420_s30 + $0x70] sm:$0xff] %v2330_v41  ;;  %v2332_v60 = vmul.f32 %v2874_v10, %v4413_v42 }
 0x51f   : > { %2348 = vst [vmem:[%s4420_s30 + $0x78] sm:$0xff] %v2332_v60 }
 0x520   : > { %2888 = shalt.err (!%p2885_p3)
}
 0x521   : > { %s2889_s0 = scalar_lea.hbm %s4455_s14, 2048  ;;  %s2893_s13 = scalar_lea.hbm %s4516_s11, 4096 }
 0x522   : > { %p2890_p4 = scmp.ne.s32.totalorder %s4455_s14, %s2889_s0  ;;  %p2894_p9 = scmp.lt.u32.totalorder %s4455_s14, %s4516_s11 }
 0x523   : > { %p2895_p10 = scmp.lt.u32.totalorder %s2893_s13, %s2889_s0  ;;  %p2897_p12 = scmp.lt.u32.totalorder %s2889_s0, %s4455_s14 }
 0x524   : > { %p2891_p7 = pnand %p2890_p4, %p3044_p5 }
 0x525   : > { %p2896_p11 = por %p2895_p10, %p2894_p9 }
 0x526   : > { %p2892_p8 = pneg %p2891_p7 }
 0x527   : > { %p2898_p13 = por %p2897_p12, %p2896_p11 }
 0x529   : > { %p2899_p0 = pnand %p2898_p13, %p2892_p8 }
 0x52b   : > { %2902 = shalt.err (!%p2899_p0)
}
 0x52c   : > { %s2944_s22 = smov 128   ;;  %s2945_s24 = smov 8  }
 0x52d   : > { %2651 = dma.vmem_to_hbm [thread:$0]  (%p3044_p5), %s4457_s29, 2048, %s4455_s14, %s4464_s21, %s2944_s22, %s2944_s22, %s2945_s24  }
 0x52e PF: > { %p2657_p1 = scmp.ge.s32.totalorder %s2937_s20, 2  ;;  %s2378_s12 = sand.u32 1, %s2925_s17  }
 0x52f   : > { %s2379_s0 = scalar_lea.sflag [#allocation3], %s2378_s12 }
 0x530   : > { %p2654_p2 = pnand %p2657_p1, %p3048_p6 }
 0x532   : > { %2920 = dma.done.wait (!%p2654_p2), %s2379_s0, 2048  }
 0x533   : > { %2922 = vsyncadd (!%p2654_p2), %s2379_s0, 4294965248  ;;  %p21_p3 = scmp.ge.s32.totalorder %s3031_s23, 4   ;;  %s4704_s17 = smov %s2929_s18 }
 0x534   : > { %s4705_s18 = smov %s2933_s19  ;;  %s4706_s19 = smov %s3042_s26 }
 0x535   : > { %s4707_s20 = smov %s3031_s23  ;;  %23 = sbr.rel (!%p21_p3) target bundleno = 5 (0x5), region = 105 }
 0x53c   :  { %2384 = vsyncpa [#allocation3], 1 }
 0x53d   :  { %2386 = vsyncpa [#allocation3 + $0x1], 1 }

</bundles_post_ra>
